<compile_context>
chip_gen: v7x
topology: tpu7x:2x2x1
jax: 0.10.0
libtpu: 0.0.40
codegen_flags: <defaults>
</compile_context>

<pallas_src>
import functools
import math

import jax
import jax.numpy as jnp
from jax import lax
from jax.experimental import pallas as pl
from jax.experimental.pallas import tpu as pltpu

HIDDEN = 32
FFN = 64
NUM_HEADS = 4            # only documents the (removed) per-head split
EPS = 1e-5
_INV_SQRT2 = 1.0 / math.sqrt(2.0)
LANES = 128

# ---- packed weight slab (96 x 128): row offsets are sublane (8) aligned ------
W1_R = 0                       # w1: (H, FFN)
W2_R = HIDDEN                  # w2: (FFN, H)
WMAT_ROWS = HIDDEN + FFN       # = 96

# ---- packed vector-param slab (8 x 128) row indices ---------------------------
R_LN1_G, R_LN1_B, R_WVO, R_LN2_G, R_LN2_B, R_B1, R_B2 = range(7)
PVEC_ROWS = 8


def _layernorm(x, g, b):
    mu = jnp.mean(x, axis=-1, keepdims=True)
    var = jnp.mean((x - mu) ** 2, axis=-1, keepdims=True)
    return (x - mu) * lax.rsqrt(var + EPS) * g + b


def encoder_layer_kernel(x_ref, wmat_ref, pvec_ref, out_ref, *, bt):
    # x block: bt instances stacked on the sublane dim -> (bt*H, H)
    x = x_ref[...]

    # one full-tile load of the vector-param slab; rows sliced in-register
    pvec = pvec_ref[...]                                        # (8, 128)
    ln1_g = pvec[R_LN1_G:R_LN1_G + 1, 0:HIDDEN]                 # (1, H)
    ln1_b = pvec[R_LN1_B:R_LN1_B + 1, 0:HIDDEN]
    wvo   = pvec[R_WVO:R_WVO + 1, 0:HIDDEN]                     # folded wv @ wo
    ln2_g = pvec[R_LN2_G:R_LN2_G + 1, 0:HIDDEN]
    ln2_b = pvec[R_LN2_B:R_LN2_B + 1, 0:HIDDEN]
    b1    = pvec[R_B1:R_B1 + 1, 0:FFN]                          # (1, FFN)
    b2    = pvec[R_B2:R_B2 + 1, 0:HIDDEN]

    w1 = wmat_ref[W1_R:W1_R + HIDDEN, 0:FFN]                    # (H, FFN)
    w2 = wmat_ref[W2_R:W2_R + FFN, 0:HIDDEN]                    # (FFN, H)

    # ---- self_attention_norm ---------------------------------------------------
    y = _layernorm(x, ln1_g, ln1_b)                             # (bt*H, H)

    # ---- MultiHeadAttention (seq_len == 1) --------------------------------------
    # attention output == V exactly; V only feeds output_layer, so the whole V
    # matmul folds into one matvec against wvo = wv @ wo.  The folded bias
    # (bv @ wo + bo) is constant per instance and cancels in the softmax.
    y3 = y.reshape(bt, HIDDEN, HIDDEN)
    wvo_b = jnp.broadcast_to(wvo.reshape(1, 1, HIDDEN), (bt, 1, HIDDEN))
    logits = jnp.einsum('boh,bnh->bon', wvo_b, y3,
                        preferred_element_type=jnp.float32)      # (bt, 1, H)
    m = jnp.max(logits, axis=-1, keepdims=True)
    e = jnp.exp(logits - m)
    attn = e * pl.reciprocal(jnp.sum(e, axis=-1, keepdims=True), approx=True)

    # residual: torch broadcasts the per-instance (N,) vector over the rows
    x2 = (x.reshape(bt, HIDDEN, HIDDEN) + attn).reshape(bt * HIDDEN, HIDDEN)

    # ---- ffn_norm + FeedForwardNetwork ------------------------------------------
    y2 = _layernorm(x2, ln2_g, ln2_b)
    h = jnp.dot(y2, w1, preferred_element_type=jnp.float32) + b1
    h = jax.nn.gelu(h, approximate=True)                         # tanh GELU -> EUP
    f = jnp.dot(h, w2, preferred_element_type=jnp.float32) + b2

    out_ref[...] = x2 + f


def encoder_layer(x, params, *, instances_per_step=4):
    """x: (N, H) for one instance (module signature) or (B, N, H) batched."""
    squeeze = (x.ndim == 2)
    xb = x[None] if squeeze else x
    B, n, h = xb.shape
    # the residual's (N,) -> (N, H) broadcast requires N == H (see header note)
    assert n == HIDDEN and h == HIDDEN, (
        f"EncoderLayer kernel requires per-instance shape ({HIDDEN},{HIDDEN}); got {xb.shape}")

    bt = min(instances_per_step, B)
    while B % bt:
        bt -= 1
    rows = bt * HIDDEN

    x2d = xb.reshape(B * HIDDEN, HIDDEN).astype(jnp.float32)

    out2d = pl.pallas_call(
        functools.partial(encoder_layer_kernel, bt=bt),
        out_shape=jax.ShapeDtypeStruct((B * HIDDEN, HIDDEN), jnp.float32),
        grid_spec=pltpu.PrefetchScalarGridSpec(
            num_scalar_prefetch=0,
            grid=(B // bt,),
            in_specs=[
                pl.BlockSpec((rows, HIDDEN), lambda i: (i, 0)),
                pl.BlockSpec((WMAT_ROWS, LANES), lambda i: (0, 0)),   # resident
                pl.BlockSpec((PVEC_ROWS, LANES), lambda i: (0, 0)),   # resident
            ],
            out_specs=pl.BlockSpec((rows, HIDDEN), lambda i: (i, 0)),
        ),
        compiler_params=pltpu.CompilerParams(
            dimension_semantics=("parallel",)),      # v7x: both TCs get work
    )(x2d, params["wmat"], params["pvec"])

    out = out2d.reshape(B, HIDDEN, HIDDEN)
    return out[0] if squeeze else out


# ---------------------------------------------------------------------------
# Pure-JAX reference on the RAW (unfolded) parameters, faithful to PyTorch
# (exact erf GELU, full output_layer bias) — validates both fold and packing.
# ---------------------------------------------------------------------------
def encoder_layer_ref(x, raw):
    if x.ndim == 3:
        return jax.vmap(lambda xi: encoder_layer_ref(xi, raw))(x)

    def ln(z, g, b):
        mu = jnp.mean(z, axis=-1, keepdims=True)
        var = jnp.mean((z - mu) ** 2, axis=-1, keepdims=True)
        return (z - mu) / jnp.sqrt(var + EPS) * g + b

    y = ln(x, raw["ln1_g"], raw["ln1_b"])
    v = y @ raw["wv"] + raw["bv"]                      # attention output == V
    logits = v @ raw["wo"][:, 0] + raw["bo"][0]        # (N,)
    attn = jax.nn.softmax(logits, axis=0)
    x2 = x + attn[None, :]
    y2 = ln(x2, raw["ln2_g"], raw["ln2_b"])
    h = y2 @ raw["w1"] + raw["b1"]
    h = 0.5 * h * (1.0 + lax.erf(h * _INV_SQRT2))      # exact GELU
    return x2 + h @ raw["w2"] + raw["b2"]


def init_params(key):
    def linear(k, fan_in, fan_out):
        kw, kb = jax.random.split(k)
        bound = 1.0 / math.sqrt(fan_in)
        w = jax.random.uniform(kw, (fan_in, fan_out), jnp.float32, -bound, bound)
        b = jax.random.uniform(kb, (fan_out,), jnp.float32, -bound, bound)
        return w, b

    kv, ko, k1, k2 = jax.random.split(key, 4)
    wv, bv = linear(kv, HIDDEN, HIDDEN)
    wo, bo = linear(ko, HIDDEN, 1)                     # output_layer: Linear(H, 1)
    w1, b1 = linear(k1, HIDDEN, FFN)
    w2, b2 = linear(k2, FFN, HIDDEN)
    ln1_g = jnp.ones((HIDDEN,), jnp.float32)
    ln1_b = jnp.zeros((HIDDEN,), jnp.float32)
    ln2_g = jnp.ones((HIDDEN,), jnp.float32)
    ln2_b = jnp.zeros((HIDDEN,), jnp.float32)

    raw = dict(wv=wv, bv=bv, wo=wo, bo=bo, w1=w1, b1=b1, w2=w2, b2=b2,
               ln1_g=ln1_g, ln1_b=ln1_b, ln2_g=ln2_g, ln2_b=ln2_b)

    # algebraic fold: wvo = wv @ wo (the folded bias bv@wo + bo cancels in softmax)
    wvo = (wv @ wo)[:, 0]

    # one lane-dense weight slab (96 x 128): 1 DMA for both FFN matrices
    wmat = jnp.zeros((WMAT_ROWS, LANES), jnp.float32)
    wmat = wmat.at[W1_R:W1_R + HIDDEN, 0:FFN].set(w1)
    wmat = wmat.at[W2_R:W2_R + FFN, 0:HIDDEN].set(w2)

    # one packed vector-param slab (8 x 128)
    pvec = jnp.zeros((PVEC_ROWS, LANES), jnp.float32)
    pvec = pvec.at[R_LN1_G, 0:HIDDEN].set(ln1_g)
    pvec = pvec.at[R_LN1_B, 0:HIDDEN].set(ln1_b)
    pvec = pvec.at[R_WVO, 0:HIDDEN].set(wvo)
    pvec = pvec.at[R_LN2_G, 0:HIDDEN].set(ln2_g)
    pvec = pvec.at[R_LN2_B, 0:HIDDEN].set(ln2_b)
    pvec = pvec.at[R_B1, 0:FFN].set(b1)
    pvec = pvec.at[R_B2, 0:HIDDEN].set(b2)

    return raw, dict(wmat=wmat, pvec=pvec)


if __name__ == "__main__":
    key = jax.random.PRNGKey(0)
    kx, kp = jax.random.split(key)
    raw, params = init_params(kp)

    # batched: 8 independent (32, 32) instances, 4 per grid step (grid = (2,))
    B = 8
    x = jax.random.normal(kx, (B, HIDDEN, HIDDEN), jnp.float32)

    out = jax.block_until_ready(encoder_layer(x, params))
    ref = jax.block_until_ready(encoder_layer_ref(x, raw))
    assert out.shape == (B, HIDDEN, HIDDEN), out.shape
    assert bool(jnp.all(jnp.isfinite(out)))
    assert bool(jnp.allclose(out, ref, rtol=2e-3, atol=2e-3)), \
        float(jnp.max(jnp.abs(out - ref)))

    # single-instance path (exact module signature: x of shape (N, H))
    x1 = x[0]
    out1 = jax.block_until_ready(encoder_layer(x1, params))
    ref1 = encoder_layer_ref(x1, raw)
    assert out1.shape == (HIDDEN, HIDDEN)
    assert bool(jnp.allclose(out1, ref1, rtol=2e-3, atol=2e-3)), \
        float(jnp.max(jnp.abs(out1 - ref1)))

    print("KERNEL_OK")
</pallas_src>

<mosaic_0001>
module attributes {stable_mosaic.version = 11 : i64} {
  func.func @encoder_layer_kernel(%arg0: i32, %arg1: memref<128x32xf32, #tpu.memory_space<vmem>>, %arg2: memref<96x128xf32, #tpu.memory_space<vmem>>, %arg3: memref<8x128xf32, #tpu.memory_space<vmem>>, %arg4: memref<128x32xf32, #tpu.memory_space<vmem>>) attributes {dimension_semantics = [#tpu.dimension_semantics<parallel>], iteration_bounds = array<i64: 2>, scalar_prefetch = 0 : i64, scratch_operands = 0 : i64, tpu.core_type = #tpu.core_type<tc>, window_params = [{transform_indices = @transform_0, window_bounds = array<i64: 128, 32>}, {pipeline_mode = #tpu.pipeline_mode<synchronous>, transform_indices = @transform_1, window_bounds = array<i64: 96, 128>}, {pipeline_mode = #tpu.pipeline_mode<synchronous>, transform_indices = @transform_2, window_bounds = array<i64: 8, 128>}, {transform_indices = @transform_3, window_bounds = array<i64: 128, 32>}]} {
    %c0 = arith.constant 0 : index
    %c0_0 = arith.constant 0 : index
    %0 = vector.load %arg1[%c0, %c0_0] : memref<128x32xf32, #tpu.memory_space<vmem>>, vector<128x32xf32>
    %c0_1 = arith.constant 0 : index
    %c0_2 = arith.constant 0 : index
    %1 = vector.load %arg3[%c0_1, %c0_2] : memref<8x128xf32, #tpu.memory_space<vmem>>, vector<8x128xf32>
    %2 = vector.extract_strided_slice %1 {offsets = [0, 0], sizes = [1, 32], strides = [1, 1]} : vector<8x128xf32> to vector<1x32xf32>
    %3 = vector.extract_strided_slice %1 {offsets = [1, 0], sizes = [1, 32], strides = [1, 1]} : vector<8x128xf32> to vector<1x32xf32>
    %4 = vector.extract_strided_slice %1 {offsets = [2, 0], sizes = [1, 32], strides = [1, 1]} : vector<8x128xf32> to vector<1x32xf32>
    %5 = vector.extract_strided_slice %1 {offsets = [3, 0], sizes = [1, 32], strides = [1, 1]} : vector<8x128xf32> to vector<1x32xf32>
    %6 = vector.extract_strided_slice %1 {offsets = [4, 0], sizes = [1, 32], strides = [1, 1]} : vector<8x128xf32> to vector<1x32xf32>
    %7 = vector.extract_strided_slice %1 {offsets = [5, 0], sizes = [1, 64], strides = [1, 1]} : vector<8x128xf32> to vector<1x64xf32>
    %8 = vector.extract_strided_slice %1 {offsets = [6, 0], sizes = [1, 32], strides = [1, 1]} : vector<8x128xf32> to vector<1x32xf32>
    %c0_3 = arith.constant 0 : index
    %c0_4 = arith.constant 0 : index
    %9 = vector.load %arg2[%c0_3, %c0_4] : memref<96x128xf32, #tpu.memory_space<vmem>>, vector<32x64xf32>
    %c32 = arith.constant 32 : index
    %c0_5 = arith.constant 0 : index
    %10 = vector.load %arg2[%c32, %c0_5] : memref<96x128xf32, #tpu.memory_space<vmem>>, vector<64x32xf32>
    %cst = arith.constant dense<0.000000e+00> : vector<128xf32>
    %11 = vector.multi_reduction <add>, %0, %cst [1] : vector<128x32xf32> to vector<128xf32>
    %12 = vector.shape_cast %11 : vector<128xf32> to vector<128x1xf32>
    %cst_6 = arith.constant 3.200000e+01 : f32
    %13 = vector.broadcast %cst_6 : f32 to vector<128x1xf32>
    %14 = arith.divf %12, %13 : vector<128x1xf32>
    %15 = vector.broadcast %14 : vector<128x1xf32> to vector<128x32xf32>
    %16 = arith.subf %0, %15 : vector<128x32xf32>
    %17 = arith.mulf %16, %16 : vector<128x32xf32>
    %cst_7 = arith.constant dense<0.000000e+00> : vector<128xf32>
    %18 = vector.multi_reduction <add>, %17, %cst_7 [1] : vector<128x32xf32> to vector<128xf32>
    %19 = vector.shape_cast %18 : vector<128xf32> to vector<128x1xf32>
    %cst_8 = arith.constant 3.200000e+01 : f32
    %20 = vector.broadcast %cst_8 : f32 to vector<128x1xf32>
    %21 = arith.divf %19, %20 : vector<128x1xf32>
    %22 = vector.broadcast %14 : vector<128x1xf32> to vector<128x32xf32>
    %23 = arith.subf %0, %22 : vector<128x32xf32>
    %cst_9 = arith.constant 9.99999974E-6 : f32
    %24 = vector.broadcast %cst_9 : f32 to vector<128x1xf32>
    %25 = arith.addf %21, %24 : vector<128x1xf32>
    %26 = math.rsqrt %25 : vector<128x1xf32>
    %27 = vector.broadcast %26 : vector<128x1xf32> to vector<128x32xf32>
    %28 = arith.mulf %23, %27 : vector<128x32xf32>
    %29 = vector.broadcast %2 : vector<1x32xf32> to vector<128x32xf32>
    %30 = arith.mulf %28, %29 : vector<128x32xf32>
    %31 = vector.broadcast %3 : vector<1x32xf32> to vector<128x32xf32>
    %32 = arith.addf %30, %31 : vector<128x32xf32>
    %33 = vector.shape_cast %32 : vector<128x32xf32> to vector<4x32x32xf32>
    %34 = vector.shape_cast %4 : vector<1x32xf32> to vector<1x1x32xf32>
    %35 = vector.shape_cast %34 : vector<1x1x32xf32> to vector<1x1x32xf32>
    %36 = vector.broadcast %35 : vector<1x1x32xf32> to vector<4x1x32xf32>
    "tpu.trace_start"() <{level = 10 : i32, message = "boh,bnh->bon"}> : () -> ()
    %cst_10 = arith.constant dense<0.000000e+00> : vector<4x1x32xf32>
    %37 = tpu.matmul %36, %33, %cst_10 {dimension_numbers = #tpu.dot_dimension_numbers<[2], [2], [1], [1], [0, 0, 0, 1, 1, 1], [0], [0]>} : vector<4x1x32xf32>, vector<4x32x32xf32>, vector<4x1x32xf32> -> vector<4x1x32xf32>
    "tpu.trace_stop"() : () -> ()
    %cst_11 = arith.constant dense<0xFF800000> : vector<4x1xf32>
    %38 = vector.multi_reduction <maximumf>, %37, %cst_11 [2] : vector<4x1x32xf32> to vector<4x1xf32>
    %39 = vector.shape_cast %38 : vector<4x1xf32> to vector<4x1x1xf32>
    %40 = vector.broadcast %39 : vector<4x1x1xf32> to vector<4x1x32xf32>
    %41 = arith.subf %37, %40 : vector<4x1x32xf32>
    %42 = math.exp %41 : vector<4x1x32xf32>
    %cst_12 = arith.constant dense<0.000000e+00> : vector<4x1xf32>
    %43 = vector.multi_reduction <add>, %42, %cst_12 [2] : vector<4x1x32xf32> to vector<4x1xf32>
    %44 = vector.shape_cast %43 : vector<4x1xf32> to vector<4x1x1xf32>
    %45 = tpu.reciprocal %44 {approx = true} : vector<4x1x1xf32> -> vector<4x1x1xf32>
    %46 = vector.broadcast %45 : vector<4x1x1xf32> to vector<4x1x32xf32>
    %47 = arith.mulf %42, %46 : vector<4x1x32xf32>
    %48 = vector.shape_cast %0 : vector<128x32xf32> to vector<4x32x32xf32>
    %49 = vector.broadcast %47 : vector<4x1x32xf32> to vector<4x32x32xf32>
    %50 = arith.addf %48, %49 : vector<4x32x32xf32>
    %51 = vector.shape_cast %50 : vector<4x32x32xf32> to vector<128x32xf32>
    %cst_13 = arith.constant dense<0.000000e+00> : vector<128xf32>
    %52 = vector.multi_reduction <add>, %51, %cst_13 [1] : vector<128x32xf32> to vector<128xf32>
    %53 = vector.shape_cast %52 : vector<128xf32> to vector<128x1xf32>
    %cst_14 = arith.constant 3.200000e+01 : f32
    %54 = vector.broadcast %cst_14 : f32 to vector<128x1xf32>
    %55 = arith.divf %53, %54 : vector<128x1xf32>
    %56 = vector.broadcast %55 : vector<128x1xf32> to vector<128x32xf32>
    %57 = arith.subf %51, %56 : vector<128x32xf32>
    %58 = arith.mulf %57, %57 : vector<128x32xf32>
    %cst_15 = arith.constant dense<0.000000e+00> : vector<128xf32>
    %59 = vector.multi_reduction <add>, %58, %cst_15 [1] : vector<128x32xf32> to vector<128xf32>
    %60 = vector.shape_cast %59 : vector<128xf32> to vector<128x1xf32>
    %cst_16 = arith.constant 3.200000e+01 : f32
    %61 = vector.broadcast %cst_16 : f32 to vector<128x1xf32>
    %62 = arith.divf %60, %61 : vector<128x1xf32>
    %63 = vector.broadcast %55 : vector<128x1xf32> to vector<128x32xf32>
    %64 = arith.subf %51, %63 : vector<128x32xf32>
    %cst_17 = arith.constant 9.99999974E-6 : f32
    %65 = vector.broadcast %cst_17 : f32 to vector<128x1xf32>
    %66 = arith.addf %62, %65 : vector<128x1xf32>
    %67 = math.rsqrt %66 : vector<128x1xf32>
    %68 = vector.broadcast %67 : vector<128x1xf32> to vector<128x32xf32>
    %69 = arith.mulf %64, %68 : vector<128x32xf32>
    %70 = vector.broadcast %5 : vector<1x32xf32> to vector<128x32xf32>
    %71 = arith.mulf %69, %70 : vector<128x32xf32>
    %72 = vector.broadcast %6 : vector<1x32xf32> to vector<128x32xf32>
    %73 = arith.addf %71, %72 : vector<128x32xf32>
    %cst_18 = arith.constant dense<0.000000e+00> : vector<128x64xf32>
    %74 = tpu.matmul %73, %9, %cst_18 {dimension_numbers = #tpu.dot_dimension_numbers<[1], [0], [0], [1], [0, 0, 1, 1], [], []>} : vector<128x32xf32>, vector<32x64xf32>, vector<128x64xf32> -> vector<128x64xf32>
    %75 = vector.broadcast %7 : vector<1x64xf32> to vector<128x64xf32>
    %76 = arith.addf %74, %75 : vector<128x64xf32>
    %77 = arith.mulf %76, %76 : vector<128x64xf32>
    %78 = arith.mulf %76, %77 : vector<128x64xf32>
    %cst_19 = arith.constant 4.471500e-02 : f32
    %79 = vector.broadcast %cst_19 : f32 to vector<128x64xf32>
    %80 = arith.mulf %79, %78 : vector<128x64xf32>
    %81 = arith.addf %76, %80 : vector<128x64xf32>
    %cst_20 = arith.constant 0.797884583 : f32
    %82 = vector.broadcast %cst_20 : f32 to vector<128x64xf32>
    %83 = arith.mulf %82, %81 : vector<128x64xf32>
    %84 = math.tanh %83 : vector<128x64xf32>
    %cst_21 = arith.constant 1.000000e+00 : f32
    %85 = vector.broadcast %cst_21 : f32 to vector<128x64xf32>
    %86 = arith.addf %85, %84 : vector<128x64xf32>
    %cst_22 = arith.constant 5.000000e-01 : f32
    %87 = vector.broadcast %cst_22 : f32 to vector<128x64xf32>
    %88 = arith.mulf %87, %86 : vector<128x64xf32>
    %89 = arith.mulf %76, %88 : vector<128x64xf32>
    %cst_23 = arith.constant dense<0.000000e+00> : vector<128x32xf32>
    %90 = tpu.matmul %89, %10, %cst_23 {dimension_numbers = #tpu.dot_dimension_numbers<[1], [0], [0], [1], [0, 0, 1, 1], [], []>} : vector<128x64xf32>, vector<64x32xf32>, vector<128x32xf32> -> vector<128x32xf32>
    %91 = vector.broadcast %8 : vector<1x32xf32> to vector<128x32xf32>
    %92 = arith.addf %90, %91 : vector<128x32xf32>
    %93 = arith.addf %51, %92 : vector<128x32xf32>
    %c0_24 = arith.constant 0 : index
    %c0_25 = arith.constant 0 : index
    %94 = vector.load %arg4[%c0_24, %c0_25] : memref<128x32xf32, #tpu.memory_space<vmem>>, vector<128x32xf32>
    tpu.vector_store %arg4[%c0_24, %c0_25], %93 {strides = array<i32>} : memref<128x32xf32, #tpu.memory_space<vmem>>, vector<128x32xf32>,
    return
  }
  func.func @transform_0(%arg0: i32) -> (i32, i32) {
    %c0_i32 = arith.constant 0 : i32
    %c0_i32_0 = arith.constant 0 : i32
    return %arg0, %c0_i32 : i32, i32
  }
  func.func @transform_1(%arg0: i32) -> (i32, i32) {
    %c0_i32 = arith.constant 0 : i32
    %c0_i32_0 = arith.constant 0 : i32
    %c0_i32_1 = arith.constant 0 : i32
    return %c0_i32, %c0_i32_0 : i32, i32
  }
  func.func @transform_2(%arg0: i32) -> (i32, i32) {
    %c0_i32 = arith.constant 0 : i32
    %c0_i32_0 = arith.constant 0 : i32
    %c0_i32_1 = arith.constant 0 : i32
    return %c0_i32, %c0_i32_0 : i32, i32
  }
  func.func @transform_3(%arg0: i32) -> (i32, i32) {
    %c0_i32 = arith.constant 0 : i32
    %c0_i32_0 = arith.constant 0 : i32
    return %arg0, %c0_i32 : i32, i32
  }
}

</mosaic_0001>

<bundles_post_ra>
// kernel: tpu_custom_call.1
= control target key start
LH: loop header
LB: loop body
LE: loop exit
PB: predicated region body
PF: predicated region fallthrough
CT: control target
= control target key end

     0   :  { %s2199_s12 = smov 0   ;;  %s3011_s0 = inlined_call_operand.vmem [shape: f32[256,32], index: 0, kind: input, shape index: {}]   ;;  %s3012_s1 = inlined_call_operand.vmem [shape: f32[96,128], index: 1, kind: input, shape index: {}]   ;;  %s3013_s2 = inlined_call_operand.vmem [shape: f32[8,128], index: 2, kind: input, shape index: {}]   ;;  %s3014_s3 = inlined_call_operand.vmem [shape: f32[256,32], index: 3, kind: output, shape index: {}]  }
   0x1 LB: > { %s1737_s13 = sadd.s32 4294967295, %s2174_s12   ;;  %p1741_p0 = scmp.ge.s32.totalorder %s2174_s12, 1  ;;  %s2174_s12 = sphi %s2199_s12, %s13_s12  }
   0x2   : > { %p138_p1 = scmp.lt.s32.totalorder %s2174_s12, 3 }
   0x4   : > { %p139_p2 = pnand %p1741_p0, %p138_p1 }
   0x5   : > { %s1742_s14 = sshll.u32 (!%p139_p2), %s1737_s13, 4  ;;  %vm203_vm0 = vcmask (!%p139_p2), 261120   ;;  %vm2177_vm1 = vmmov (!%p139_p2), 0   ;;  %vm785_vm3 = vcmask (!%p139_p2), 253952   ;;  %vm1455_vm4 = vcmask (!%p139_p2), 523264  }
   0x6   : > { %142 = sbr.rel (%p139_p2) target bundleno = 1690 (0x69a), region = 32  ;;  %p163_p3 = scmp.lt.s32.totalorder (!%p139_p2), %s1742_s14, 31  ;;  %vm2427_vm2 = vmpackc.low (!%p139_p2), %vm203_vm0, %vm203_vm0 }
   0xd   : > { %s3018_s14 = smov (!%p163_p3, %s1742_s14), 31 }
   0xe   : > { %s1743_s15 = sshll.u32 %s3018_s14, 3 }
   0xf   : > { %s2215_s18 = scalar_lea.vmem %s3011_s0, %s1743_s15  ;;  %s2958_s25 = scalar_lea.vmem %s3014_s3, %s1743_s15 }
  0x10   : > { %v2218_v0 = vld [vmem:[%s2215_s18] sm:$0xff]  ;;  %v2221_v1 = vld [vmem:[%s2215_s18 + $0x10] sm:$0xff]  ;;  %v2224_v2 = vld [vmem:[%s2215_s18 + $0x8] sm:$0xff] }
  0x11   : > { %v204_v3 = vsel %vm203_vm0, %v2218_v0, 0.0  ;;  %v210_v4 = vsel %vm203_vm0, %v2221_v1, 0.0  ;;  %v2231_v5 = vld [vmem:[%s2215_s18 + $0x18] sm:$0xff]  ;;  %v207_v6 = vsel %vm203_vm0, %v2224_v2, 0.0  ;;  %v2238_v8 = vld [vmem:[%s2215_s18 + $0x20] sm:$0xff]  ;;  %v2241_v9 = vld [vmem:[%s2215_s18 + $0x28] sm:$0xff] }
  0x12   : > { %205 = vadd.xlane.f32.xlu0 %v204_v3  ;;  %211 = vadd.xlane.f32.xlu1 %v210_v4  ;;  %v213_v7 = vsel %vm203_vm0, %v2231_v5, 0.0  ;;  %v216_v10 = vsel %vm203_vm0, %v2238_v8, 0.0  ;;  %v219_v11 = vsel %vm203_vm0, %v2241_v9, 0.0  ;;  %v2248_v12 = vld [vmem:[%s2215_s18 + $0x30] sm:$0xff]  ;;  %v2251_v13 = vld [vmem:[%s2215_s18 + $0x38] sm:$0xff]  ;;  %v2258_v16 = vld [vmem:[%s2215_s18 + $0x40] sm:$0xff] }
  0x13   : > { %v222_v14 = vsel %vm203_vm0, %v2248_v12, 0.0  ;;  %v225_v15 = vsel %vm203_vm0, %v2251_v13, 0.0  ;;  %v2261_v17 = vld [vmem:[%s2215_s18 + $0x48] sm:$0xff]  ;;  %v228_v18 = vsel %vm203_vm0, %v2258_v16, 0.0  ;;  %v2268_v20 = vld [vmem:[%s2215_s18 + $0x50] sm:$0xff]  ;;  %v2271_v21 = vld [vmem:[%s2215_s18 + $0x58] sm:$0xff] }
  0x14   : > { %v231_v19 = vsel %vm203_vm0, %v2261_v17, 0.0  ;;  %v234_v22 = vsel %vm203_vm0, %v2268_v20, 0.0  ;;  %v237_v23 = vsel %vm203_vm0, %v2271_v21, 0.0  ;;  %v2278_v24 = vld [vmem:[%s2215_s18 + $0x60] sm:$0xff]  ;;  %v2281_v25 = vld [vmem:[%s2215_s18 + $0x68] sm:$0xff]  ;;  %v2288_v28 = vld [vmem:[%s2215_s18 + $0x70] sm:$0xff] }
  0x15   : > { %v240_v26 = vsel %vm203_vm0, %v2278_v24, 0.0  ;;  %v243_v27 = vsel %vm203_vm0, %v2281_v25, 0.0  ;;  %v2291_v29 = vld [vmem:[%s2215_s18 + $0x78] sm:$0xff]  ;;  %v246_v30 = vsel %vm203_vm0, %v2288_v28, 0.0 }
  0x16   : > { %208 = vadd.xlane.f32.xlu0 %v207_v6  ;;  %214 = vadd.xlane.f32.xlu1 %v213_v7  ;;  %v249_v31 = vsel %vm203_vm0, %v2291_v29, 0.0 }
  0x1a   : > { %217 = vadd.xlane.f32.xlu0 %v216_v10  ;;  %220 = vadd.xlane.f32.xlu1 %v219_v11 }
  0x1e   : > { %223 = vadd.xlane.f32.xlu0 %v222_v14  ;;  %226 = vadd.xlane.f32.xlu1 %v225_v15 }
  0x22   : > { %229 = vadd.xlane.f32.xlu0 %v228_v18  ;;  %232 = vadd.xlane.f32.xlu1 %v231_v19 }
  0x26   : > { %235 = vadd.xlane.f32.xlu0 %v234_v22  ;;  %238 = vadd.xlane.f32.xlu1 %v237_v23 }
  0x2a   : > { %241 = vadd.xlane.f32.xlu0 %v240_v26  ;;  %244 = vadd.xlane.f32.xlu1 %v243_v27 }
  0x2e   : > { %247 = vadd.xlane.f32.xlu0 %v246_v30  ;;  %250 = vadd.xlane.f32.xlu1 %v249_v31 }
  0x9f   : > { %v206_v32 = vpop.xlane.xlu0 %205  ;;  %v212_v33 = vpop.xlane.xlu1 %211 }
  0xa0   : > { %v253_v34 = vmul.f32 0.03125, %v206_v32  ;;  %v255_v35 = vmul.f32 0.03125, %v212_v33 }
  0xa2   : > { %v2298_v36 = vsub.f32 %v2218_v0, %v253_v34  ;;  %v2301_v37 = vsub.f32 %v2221_v1, %v255_v35 }
  0xa3   : > { %v209_v38 = vpop.xlane.xlu0 %208  ;;  %v215_v39 = vpop.xlane.xlu1 %214 }
  0xa4   : > { %v254_v40 = vmul.f32 0.03125, %v209_v38  ;;  %v256_v41 = vmul.f32 0.03125, %v215_v39  ;;  %v285_v42 = vmul.f32 %v2298_v36, %v2298_v36  ;;  %v287_v43 = vmul.f32 %v2301_v37, %v2301_v37 }
  0xa6   : > { %v2308_v44 = vsub.f32 %v2224_v2, %v254_v40  ;;  %v2311_v45 = vsub.f32 %v2231_v5, %v256_v41  ;;  %v301_v46 = vsel %vm203_vm0, %v285_v42, 0.0  ;;  %v307_v49 = vsel %vm203_vm0, %v287_v43, 0.0 }
  0xa7   : > { %302 = vadd.xlane.f32.xlu0 %v301_v46  ;;  %v218_v47 = vpop.xlane.xlu0 %217  ;;  %v221_v48 = vpop.xlane.xlu1 %220 }
  0xa8   : > { %v257_v50 = vmul.f32 0.03125, %v218_v47  ;;  %v258_v51 = vmul.f32 0.03125, %v221_v48  ;;  %v286_v52 = vmul.f32 %v2308_v44, %v2308_v44  ;;  %v288_v53 = vmul.f32 %v2311_v45, %v2311_v45 }
  0xaa   : > { %v2320_v54 = vsub.f32 %v2238_v8, %v257_v50  ;;  %v2323_v55 = vsub.f32 %v2241_v9, %v258_v51  ;;  %v304_v56 = vsel %vm203_vm0, %v286_v52, 0.0  ;;  %v310_v59 = vsel %vm203_vm0, %v288_v53, 0.0 }
  0xab   : > { %308 = vadd.xlane.f32.xlu0 %v307_v49  ;;  %305 = vadd.xlane.f32.xlu1 %v304_v56  ;;  %v224_v57 = vpop.xlane.xlu0 %223  ;;  %v227_v58 = vpop.xlane.xlu1 %226 }
  0xac   : > { %v259_v60 = vmul.f32 0.03125, %v224_v57  ;;  %v260_v61 = vmul.f32 0.03125, %v227_v58  ;;  %v289_v62 = vmul.f32 %v2320_v54, %v2320_v54  ;;  %v290_v63 = vmul.f32 %v2323_v55, %v2323_v55 }
  0xae   : > { %v2332_v3 = vsub.f32 %v2248_v12, %v259_v60  ;;  %v2335_v4 = vsub.f32 %v2251_v13, %v260_v61  ;;  %v313_v6 = vsel %vm203_vm0, %v289_v62, 0.0  ;;  %v316_v11 = vsel %vm203_vm0, %v290_v63, 0.0 }
  0xaf   : > { %311 = vadd.xlane.f32.xlu1 %v310_v59  ;;  %314 = vadd.xlane.f32.xlu0 %v313_v6  ;;  %v230_v7 = vpop.xlane.xlu0 %229  ;;  %v233_v10 = vpop.xlane.xlu1 %232 }
  0xb0   : > { %v261_v14 = vmul.f32 0.03125, %v230_v7  ;;  %v262_v15 = vmul.f32 0.03125, %v233_v10  ;;  %v291_v18 = vmul.f32 %v2332_v3, %v2332_v3  ;;  %v292_v19 = vmul.f32 %v2335_v4, %v2335_v4 }
  0xb2   : > { %v2344_v22 = vsub.f32 %v2258_v16, %v261_v14  ;;  %v2347_v23 = vsub.f32 %v2261_v17, %v262_v15  ;;  %v319_v26 = vsel %vm203_vm0, %v291_v18, 0.0  ;;  %v322_v31 = vsel %vm203_vm0, %v292_v19, 0.0 }
  0xb3   : > { %317 = vadd.xlane.f32.xlu1 %v316_v11  ;;  %320 = vadd.xlane.f32.xlu0 %v319_v26  ;;  %v236_v27 = vpop.xlane.xlu0 %235  ;;  %v239_v30 = vpop.xlane.xlu1 %238  ;;  %v2176_v18 = vmov 0.0|0.0   ;;  %v2178_v19 = vmov 0.0  }
  0xb4   : > { %v263_v32 = vmul.f32 0.03125, %v236_v27  ;;  %v264_v33 = vmul.f32 0.03125, %v239_v30  ;;  %v293_v34 = vmul.f32 %v2344_v22, %v2344_v22  ;;  %v294_v35 = vmul.f32 %v2347_v23, %v2347_v23  ;;  %1980 = vmatprep.subr.bf16.mxu0 %v2176_v18  ;;  %1988 = vmatprep.subr.bf16.mxu1 %v2176_v18 }
  0xb5   : > { %1872 = vmatprep.mubr.msk.f32.mxu0 %vm2177_vm1, %v2178_v19  ;;  %1883 = vmatprep.mubr.msk.f32.mxu1 %vm2177_vm1, %v2178_v19 }
  0xb6   : > { %v2356_v38 = vsub.f32 %v2268_v20, %v263_v32  ;;  %v2359_v39 = vsub.f32 %v2271_v21, %v264_v33  ;;  %v325_v40 = vsel %vm203_vm0, %v293_v34, 0.0  ;;  %v328_v43 = vsel %vm203_vm0, %v294_v35, 0.0 }
  0xb7   : > { %323 = vadd.xlane.f32.xlu1 %v322_v31  ;;  %326 = vadd.xlane.f32.xlu0 %v325_v40  ;;  %v242_v41 = vpop.xlane.xlu0 %241  ;;  %v245_v42 = vpop.xlane.xlu1 %244  ;;  %v413_v33 = vlaneseq }
  0xb8   : > { %v265_v46 = vmul.f32 0.03125, %v242_v41  ;;  %v266_v47 = vmul.f32 0.03125, %v245_v42  ;;  %v295_v48 = vmul.f32 %v2356_v38, %v2356_v38  ;;  %v296_v49 = vmul.f32 %v2359_v39, %v2359_v39 }
  0xba   : > { %v2368_v50 = vsub.f32 %v2278_v24, %v265_v46  ;;  %v2371_v51 = vsub.f32 %v2281_v25, %v266_v47  ;;  %v331_v52 = vsel %vm203_vm0, %v295_v48, 0.0  ;;  %v334_v57 = vsel %vm203_vm0, %v296_v49, 0.0 }
  0xbb   : > { %329 = vadd.xlane.f32.xlu1 %v328_v43  ;;  %332 = vadd.xlane.f32.xlu0 %v331_v52  ;;  %v248_v53 = vpop.xlane.xlu0 %247  ;;  %v251_v56 = vpop.xlane.xlu1 %250  ;;  %v2399_v46 = vshrl.u32 %v413_v33, 7 }
  0xbc   : > { %v267_v58 = vmul.f32 0.03125, %v248_v53  ;;  %v268_v59 = vmul.f32 0.03125, %v251_v56  ;;  %v297_v60 = vmul.f32 %v2368_v50, %v2368_v50  ;;  %v298_v61 = vmul.f32 %v2371_v51, %v2371_v51 }
  0xbe   : > { %v2380_v62 = vsub.f32 %v2288_v28, %v267_v58  ;;  %v2383_v63 = vsub.f32 %v2291_v29, %v268_v59  ;;  %v337_v6 = vsel %vm203_vm0, %v297_v60, 0.0  ;;  %v340_v7 = vsel %vm203_vm0, %v298_v61, 0.0  ;;  %v2407_v60 = vld [vmem:[%s3013_s2] sm:$0xff] }
  0xbf   : > { %335 = vadd.xlane.f32.xlu1 %v334_v57  ;;  %338 = vadd.xlane.f32.xlu0 %v337_v6  ;;  %v2402_v57 = vsub.s32 0, %v2399_v46 }
  0xc0   : > { %v299_v10 = vmul.f32 %v2380_v62, %v2380_v62  ;;  %v300_v11 = vmul.f32 %v2383_v63, %v2383_v63 }
  0xc2   : > { %v343_v14 = vsel %vm203_vm0, %v299_v10, 0.0  ;;  %v346_v15 = vsel %vm203_vm0, %v300_v11, 0.0  ;;  %v2411_v11 = vrot.slane %v2407_v60, %v2402_v57 }
  0xc3   : > { %341 = vadd.xlane.f32.xlu1 %v340_v7  ;;  %344 = vadd.xlane.f32.xlu0 %v343_v14 }
  0xc7   : > { %347 = vadd.xlane.f32.xlu1 %v346_v15 }
 0x134   : > { %v303_v26 = vpop.xlane.xlu0 %302 }
 0x135   : > { %v349_v27 = vmul.f32 0.03125, %v303_v26  ;;  %v435_v26 = vsub.s32 1, %v2399_v46 }
 0x137   : > { %v365_v30 = vadd.f32 1e-05, %v349_v27 }
 0x138   : > { %v306_v31 = vpop.xlane.xlu1 %305  ;;  %v309_v32 = vpop.xlane.xlu0 %308 }
 0x139   : > { %2055 = vrsqrt.f32 %v365_v30  ;;  %v350_v34 = vmul.f32 0.03125, %v306_v31  ;;  %v351_v35 = vmul.f32 0.03125, %v309_v32 }
 0x13b   : > { %v366_v40 = vadd.f32 1e-05, %v350_v34  ;;  %v367_v41 = vadd.f32 1e-05, %v351_v35 }
 0x13c   : > { %v312_v42 = vpop.xlane.xlu1 %311  ;;  %v315_v43 = vpop.xlane.xlu0 %314 }
 0x13d   : > { %2057 = vrsqrt.f32 %v366_v40  ;;  %v352_v47 = vmul.f32 0.03125, %v312_v42  ;;  %v353_v48 = vmul.f32 0.03125, %v315_v43  ;;  %v2418_v43 = vrot.slane %v2407_v60, %v435_v26 }
 0x13e   : > { %2059 = vrsqrt.f32 %v367_v41 }
 0x13f   : > { %v368_v49 = vadd.f32 1e-05, %v352_v47  ;;  %v369_v52 = vadd.f32 1e-05, %v353_v48 }
 0x140   : > { %v318_v53 = vpop.xlane.xlu1 %317  ;;  %v321_v56 = vpop.xlane.xlu0 %320 }
 0x141   : > { %2061 = vrsqrt.f32 %v368_v49  ;;  %v354_v58 = vmul.f32 0.03125, %v318_v53  ;;  %v355_v59 = vmul.f32 0.03125, %v321_v56 }
 0x142   : > { %2063 = vrsqrt.f32 %v369_v52 }
 0x143   : > { %v2056_v61 = vpop.eup %2055  ;;  %v370_v6 = vadd.f32 1e-05, %v354_v58  ;;  %v371_v7 = vadd.f32 1e-05, %v355_v59 }
 0x144   : > { %v324_v10 = vpop.xlane.xlu1 %323  ;;  %v327_v14 = vpop.xlane.xlu0 %326  ;;  %v397_v15 = vmul.f32 %v2056_v61, %v2298_v36 }
 0x145   : > { %2065 = vrsqrt.f32 %v370_v6  ;;  %v356_v27 = vmul.f32 0.03125, %v324_v10  ;;  %v357_v30 = vmul.f32 0.03125, %v327_v14 }
 0x146   : > { %2067 = vrsqrt.f32 %v371_v7  ;;  %v417_v42 = vmul.f32 %v2411_v11, %v397_v15 }
 0x147   : > { %v2058_v31 = vpop.eup %2057  ;;  %v372_v32 = vadd.f32 1e-05, %v356_v27  ;;  %v373_v33 = vadd.f32 1e-05, %v357_v30 }
 0x148   : > { %v2060_v34 = vpop.eup %2059  ;;  %v330_v35 = vpop.xlane.xlu1 %329  ;;  %v398_v41 = vmul.f32 %v2058_v31, %v2308_v44  ;;  %v437_v6 = vadd.f32 %v2418_v43, %v417_v42 }
 0x149   : > { %v333_v40 = vpop.xlane.xlu0 %332  ;;  %2069 = vrsqrt.f32 %v372_v32  ;;  %v358_v36 = vmul.f32 0.03125, %v330_v35  ;;  %v399_v52 = vmul.f32 %v2060_v34, %v2301_v37 }
 0x14a   : > { %v359_v47 = vmul.f32 0.03125, %v333_v40  ;;  %2071 = vrsqrt.f32 %v373_v33  ;;  %v418_v48 = vmul.f32 %v2411_v11, %v398_v41 }
 0x14b   : > { %v2062_v49 = vpop.eup %2061  ;;  %v374_v53 = vadd.f32 1e-05, %v358_v36  ;;  %v419_v32 = vmul.f32 %v2411_v11, %v399_v52 }
 0x14c   : > { %v375_v56 = vadd.f32 1e-05, %v359_v47  ;;  %v2064_v58 = vpop.eup %2063  ;;  %v400_v59 = vmul.f32 %v2062_v49, %v2311_v45  ;;  %v336_v44 = vpop.xlane.xlu1 %335  ;;  %v438_v7 = vadd.f32 %v2418_v43, %v418_v48 }
 0x14d   : > { %v339_v61 = vpop.xlane.xlu0 %338  ;;  %2073 = vrsqrt.f32 %v374_v53  ;;  %v360_v10 = vmul.f32 0.03125, %v336_v44  ;;  %v401_v45 = vmul.f32 %v2064_v58, %v2320_v54  ;;  %v439_v53 = vadd.f32 %v2418_v43, %v419_v32 }
 0x14e   : > { %v361_v14 = vmul.f32 0.03125, %v339_v61  ;;  %2075 = vrsqrt.f32 %v375_v56  ;;  %v1981_v37 = vpack.c.bf16 %v438_v7, %v437_v6  ;;  %v420_v26 = vmul.f32 %v2411_v11, %v400_v59 }
 0x14f   : > { %v2066_v27 = vpop.eup %2065  ;;  %v376_v30 = vadd.f32 1e-05, %v360_v10  ;;  %v421_v40 = vmul.f32 %v2411_v11, %v401_v45 }
 0x150   : > { %v377_v31 = vadd.f32 1e-05, %v361_v14  ;;  %v342_v33 = vpop.xlane.xlu1 %341  ;;  %1983 = vmatpush3.bf16.xpose.msk.msra.mxu0 %vm2427_vm2, %v1981_v37  ;;  %v402_v35 = vmul.f32 %v2066_v27, %v2323_v55  ;;  %v2068_v41 = vpop.eup %2067  ;;  %v440_v54 = vadd.f32 %v2418_v43, %v420_v26 }
 0x151   : > { %v345_v34 = vpop.xlane.xlu0 %344  ;;  %2077 = vrsqrt.f32 %v376_v30  ;;  %v362_v42 = vmul.f32 0.03125, %v342_v33  ;;  %1984 = vmatprep.subr.bf16.mxu0 %v2176_v18  ;;  %v403_v55 = vmul.f32 %v2068_v41, %v2332_v3  ;;  %v441_v44 = vadd.f32 %v2418_v43, %v421_v40 }
 0x152   : > { %v363_v36 = vmul.f32 0.03125, %v345_v34  ;;  %2079 = vrsqrt.f32 %v377_v31  ;;  %v422_v47 = vmul.f32 %v2411_v11, %v402_v35  ;;  %v1985_v10 = vpack.c.bf16 %v440_v54, %v439_v53 }
 0x153   : > { %v2070_v48 = vpop.eup %2069  ;;  %v378_v49 = vadd.f32 1e-05, %v362_v42  ;;  %v454_v33 = vrot.slane %v2407_v60, 2 }
 0x154   : > { %v379_v52 = vadd.f32 1e-05, %v363_v36  ;;  %v2072_v56 = vpop.eup %2071  ;;  %v404_v58 = vmul.f32 %v2070_v48, %v2335_v4  ;;  %v348_v59 = vpop.xlane.xlu1 %347  ;;  %v442_v61 = vadd.f32 %v2418_v43, %v422_v47 }
 0x155   : > { %v405_v6 = vmul.f32 %v2072_v56, %v2344_v22  ;;  %2081 = vrsqrt.f32 %v378_v49  ;;  %v364_v7 = vmul.f32 0.03125, %v348_v59  ;;  %v423_v22 = vmul.f32 %v2411_v11, %v403_v55 }
 0x156   : > { %v1989_v14 = vpack.c.bf16 %v442_v61, %v441_v44  ;;  %v424_v37 = vmul.f32 %v2411_v11, %v404_v58  ;;  %2083 = vrsqrt.f32 %v379_v52 }
 0x157   : > { %v2074_v26 = vpop.eup %2073  ;;  %v380_v45 = vadd.f32 1e-05, %v364_v7  ;;  %v425_v3 = vmul.f32 %v2411_v11, %v405_v6  ;;  %v443_v40 = vadd.f32 %v2418_v43, %v423_v22 }
 0x158   : > { %v2076_v27 = vpop.eup %2075  ;;  %v406_v4 = vmul.f32 %v2074_v26, %v2347_v23  ;;  %1987 = vmatpush3.bf16.xpose.msk.msra.mxu0 %vm2427_vm2, %v1985_v10  ;;  %1991 = vmatpush3.bf16.xpose.msk.msra.mxu1 %vm2427_vm2, %v1989_v14  ;;  %v444_v31 = vadd.f32 %v2418_v43, %v424_v37 }
 0x159   : > { %2085 = vrsqrt.f32 %v380_v45  ;;  %1992 = vmatprep.subr.bf16.mxu1 %v2176_v18  ;;  %1996 = vmatprep.subr.bf16.mxu0 %v2176_v18  ;;  %v407_v23 = vmul.f32 %v2076_v27, %v2356_v38  ;;  %v445_v41 = vadd.f32 %v2418_v43, %v425_v3 }
 0x15a   : > { %v426_v30 = vmul.f32 %v2411_v11, %v406_v4  ;;  %v1993_v47 = vpack.c.bf16 %v444_v31, %v443_v40 }
 0x15b   : > { %v2078_v32 = vpop.eup %2077  ;;  %v427_v38 = vmul.f32 %v2411_v11, %v407_v23 }
 0x15c   : > { %v2080_v34 = vpop.eup %2079  ;;  %v408_v35 = vmul.f32 %v2078_v32, %v2359_v39  ;;  %v446_v42 = vadd.f32 %v2418_v43, %v426_v30 }
 0x15d   : > { %v409_v36 = vmul.f32 %v2080_v34, %v2368_v50 }
 0x15e   : > { %v428_v54 = vmul.f32 %v2411_v11, %v408_v35  ;;  %v1997_v48 = vpack.c.bf16 %v446_v42, %v445_v41 }
 0x15f   : > { %v2082_v49 = vpop.eup %2081  ;;  %1873 = vmatmul.mubr.msk.f32.vlgmr.msra.gmra.mrb[0].mxu0 %vm203_vm0, %v454_v33  ;;  %v429_v52 = vmul.f32 %v2411_v11, %v409_v36 }
 0x160   : > { %v410_v39 = vmul.f32 %v2082_v49, %v2371_v51  ;;  %1995 = vmatpush3.bf16.xpose.msk.msra.mxu1 %vm2427_vm2, %v1993_v47  ;;  %1999 = vmatpush3.bf16.xpose.msk.msra.mxu0 %vm2427_vm2, %v1997_v48  ;;  %v2084_v50 = vpop.eup %2083  ;;  %v448_v56 = vadd.f32 %v2418_v43, %v428_v54  ;;  %v447_v51 = vadd.f32 %v2418_v43, %v427_v38 }
 0x161   : > { %2000 = vmatprep.subr.bf16.mxu0 %v2176_v18  ;;  %2004 = vmatprep.subr.bf16.mxu1 %v2176_v18  ;;  %v411_v58 = vmul.f32 %v2084_v50, %v2380_v62  ;;  %v449_v44 = vadd.f32 %v2418_v43, %v429_v52 }
 0x162   : > { %v430_v53 = vmul.f32 %v2411_v11, %v410_v39  ;;  %1894 = vmatprep.mubr.msk.f32.mxu0 %vm2177_vm1, %v2178_v19  ;;  %v2001_v7 = vpack.c.bf16 %v448_v56, %v447_v51 }
 0x163   : > { %v2086_v55 = vpop.eup %2085  ;;  %v431_v14 = vmul.f32 %v2411_v11, %v411_v58 }
 0x164   : > { %v412_v59 = vmul.f32 %v2086_v55, %v2383_v63  ;;  %v450_v61 = vadd.f32 %v2418_v43, %v430_v53 }
 0x165   : > { %v451_v63 = vadd.f32 %v2418_v43, %v431_v14 }
 0x166   : > { %v432_v6 = vmul.f32 %v2411_v11, %v412_v59  ;;  %v2005_v10 = vpack.c.bf16 %v450_v61, %v449_v44 }
 0x167   : > { %1884 = vmatmul.mubr.msk.f32.vlgmr.msra.gmra.mrb[0].mxu1 %vm203_vm0, %v454_v33 }
 0x168   : > { %2003 = vmatpush3.bf16.xpose.msk.msra.mxu0 %vm2427_vm2, %v2001_v7  ;;  %2007 = vmatpush3.bf16.xpose.msk.msra.mxu1 %vm2427_vm2, %v2005_v10  ;;  %v452_v62 = vadd.f32 %v2418_v43, %v432_v6 }
 0x169   : > { %2008 = vmatprep.subr.bf16.mxu1 %v2176_v18  ;;  %1905 = vmatprep.mubr.msk.f32.mxu1 %vm2177_vm1, %v2178_v19 }
 0x16a   : > { %v2009_v37 = vpack.c.bf16 %v452_v62, %v451_v63 }
 0x16f   : > { %1895 = vmatmul.mubr.msk.f32.vlgmr.msra.gmra.mrb[2].mxu0 %vm203_vm0, %v454_v33 }
 0x170   : > { %2011 = vmatpush3.bf16.xpose.msk.msra.mxu1 %vm2427_vm2, %v2009_v37 }
 0x177   : > { %1906 = vmatmul.mubr.msk.f32.vlgmr.msra.gmra.mrb[2].mxu1 %vm203_vm0, %v454_v33 }
 0x232   : > { %v535_v11 = vpop.f32.mrb[0].mxu0 }
 0x233   : > { %v1874_v26 = vpop.f32.mrb[1].mxu0  ;;  %v786_v18 = vsel %vm785_vm3, %v535_v11, -inf }
 0x234   : > { %787 = vmax.xlane.f32.xlu0 %v786_v18 }
 0x23a   : > { %v617_v45 = vpop.f32.mrb[0].mxu1 }
 0x23b   : > { %v1885_v19 = vpop.f32.mrb[1].mxu1  ;;  %v789_v27 = vsel %vm785_vm3, %v617_v45, -inf }
 0x23c   : > { %790 = vmax.xlane.f32.xlu1 %v789_v27 }
 0x242   : > { %v699_v43 = vpop.f32.mrb[2].mxu0 }
 0x243   : > { %v1896_v3 = vpop.f32.mrb[3].mxu0  ;;  %v792_v4 = vsel %vm785_vm3, %v699_v43, -inf }
 0x244   : > { %793 = vmax.xlane.f32.xlu0 %v792_v4 }
 0x24a   : > { %v781_v15 = vpop.f32.mrb[2].mxu1 }
 0x24b   : > { %v1907_v22 = vpop.f32.mrb[3].mxu1  ;;  %v795_v30 = vsel %vm785_vm3, %v781_v15, -inf }
 0x24c   : > { %796 = vmax.xlane.f32.xlu1 %v795_v30 }
 0x2c1   : > { %v788_v31 = vpop.xlane.xlu0 %787 }
 0x2c2   : > { %v798_v32 = vsub.f32 %v535_v11, %v788_v31 }
 0x2c4   : > { %v802_v23 = vmul.f32 1.442695, %v798_v32 }
 0x2c6   : > { %2087 = vpow2.f32 %v802_v23 }
 0x2c9   : > { %v791_v33 = vpop.xlane.xlu1 %790 }
 0x2ca   : > { %v799_v34 = vsub.f32 %v617_v45, %v791_v33 }
 0x2cc   : > { %v804_v35 = vmul.f32 1.442695, %v799_v34 }
 0x2ce   : > { %2089 = vpow2.f32 %v804_v35 }
 0x2d0   : > { %v2088_v40 = vpop.eup %2087 }
 0x2d1   : > { %v794_v41 = vpop.xlane.xlu0 %793  ;;  %v810_v42 = vsel %vm785_vm3, %v2088_v40, 0.0 }
 0x2d2   : > { %v800_v36 = vsub.f32 %v699_v43, %v794_v41  ;;  %811 = vadd.xlane.f32.xlu0 %v810_v42 }
 0x2d4   : > { %v806_v54 = vmul.f32 1.442695, %v800_v36 }
 0x2d6   : > { %2091 = vpow2.f32 %v806_v54 }
 0x2d8   : > { %v2090_v47 = vpop.eup %2089 }
 0x2d9   : > { %v797_v48 = vpop.xlane.xlu1 %796  ;;  %v813_v49 = vsel %vm785_vm3, %v2090_v47, 0.0 }
 0x2da   : > { %v801_v38 = vsub.f32 %v781_v15, %v797_v48  ;;  %814 = vadd.xlane.f32.xlu1 %v813_v49 }
 0x2dc   : > { %v808_v52 = vmul.f32 1.442695, %v801_v38 }
 0x2de   : > { %2093 = vpow2.f32 %v808_v52 }
 0x2e0   : > { %v2092_v39 = vpop.eup %2091 }
 0x2e1   : > { %v816_v50 = vsel %vm785_vm3, %v2092_v39, 0.0 }
 0x2e2   : > { %817 = vadd.xlane.f32.xlu0 %v816_v50 }
 0x2e8   : > { %v2094_v53 = vpop.eup %2093 }
 0x2e9   : > { %v819_v56 = vsel %vm785_vm3, %v2094_v53, 0.0 }
 0x2ea   : > { %820 = vadd.xlane.f32.xlu1 %v819_v56 }
 0x35f   : > { %v812_v55 = vpop.xlane.xlu0 %811 }
 0x360   : > { %2095 = vrcp.f32 %v812_v55 }
 0x367   : > { %v815_v51 = vpop.xlane.xlu1 %814 }
 0x368   : > { %2097 = vrcp.f32 %v815_v51 }
 0x36a   : > { %v2096_v58 = vpop.eup %2095 }
 0x36b   : > { %v826_v59 = vmul.f32 %v2096_v58, %v2088_v40 }
 0x36d   : > { %v833_v44 = vrot.slane %v826_v59, %v2402_v57 }
 0x36f   : > { %v818_v61 = vpop.xlane.xlu0 %817  ;;  %v2512_v6 = vadd.f32 %v833_v44, %v2224_v2  ;;  %v2515_v7 = vadd.f32 %v833_v44, %v2218_v0  ;;  %v2522_v62 = vadd.f32 %v833_v44, %v2231_v5  ;;  %v2525_v63 = vadd.f32 %v833_v44, %v2221_v1 }
 0x370   : > { %2099 = vrcp.f32 %v818_v61 }
 0x371   : > { %v865_v10 = vsel %vm203_vm0, %v2512_v6, 0.0  ;;  %v862_v14 = vsel %vm203_vm0, %v2515_v7, 0.0  ;;  %v871_v0 = vsel %vm203_vm0, %v2522_v62, 0.0  ;;  %v868_v11 = vsel %vm203_vm0, %v2525_v63, 0.0 }
 0x372   : > { %v2098_v37 = vpop.eup %2097  ;;  %866 = vadd.xlane.f32.xlu1 %v865_v10  ;;  %863 = vadd.xlane.f32.xlu0 %v862_v14 }
 0x373   : > { %v827_v2 = vmul.f32 %v2098_v37, %v2090_v47 }
 0x375   : > { %v837_v26 = vrot.slane %v827_v2, %v2402_v57 }
 0x376   : > { %872 = vadd.xlane.f32.xlu1 %v871_v0  ;;  %869 = vadd.xlane.f32.xlu0 %v868_v11 }
 0x377   : > { %v821_v18 = vpop.xlane.xlu1 %820  ;;  %v2533_v5 = vadd.f32 %v837_v26, %v2241_v9  ;;  %v2536_v1 = vadd.f32 %v837_v26, %v2238_v8  ;;  %v2543_v27 = vadd.f32 %v837_v26, %v2251_v13  ;;  %v2546_v43 = vadd.f32 %v837_v26, %v2248_v12 }
 0x378   : > { %2101 = vrcp.f32 %v821_v18 }
 0x379   : > { %v877_v45 = vsel %vm203_vm0, %v2533_v5, 0.0  ;;  %v874_v19 = vsel %vm203_vm0, %v2536_v1, 0.0  ;;  %v883_v8 = vsel %vm203_vm0, %v2543_v27, 0.0  ;;  %v880_v4 = vsel %vm203_vm0, %v2546_v43, 0.0 }
 0x37a   : > { %v2100_v3 = vpop.eup %2099  ;;  %878 = vadd.xlane.f32.xlu1 %v877_v45  ;;  %875 = vadd.xlane.f32.xlu0 %v874_v19 }
 0x37b   : > { %v828_v9 = vmul.f32 %v2100_v3, %v2092_v39 }
 0x37d   : > { %v841_v15 = vrot.slane %v828_v9, %v2402_v57 }
 0x37e   : > { %884 = vadd.xlane.f32.xlu1 %v883_v8  ;;  %881 = vadd.xlane.f32.xlu0 %v880_v4 }
 0x37f   : > { %v2554_v13 = vadd.f32 %v841_v15, %v2261_v17  ;;  %v2557_v12 = vadd.f32 %v841_v15, %v2258_v16  ;;  %v2564_v31 = vadd.f32 %v841_v15, %v2271_v21  ;;  %v2567_v32 = vadd.f32 %v841_v15, %v2268_v20 }
 0x381   : > { %v889_v22 = vsel %vm203_vm0, %v2554_v13, 0.0  ;;  %v886_v30 = vsel %vm203_vm0, %v2557_v12, 0.0  ;;  %v895_v16 = vsel %vm203_vm0, %v2564_v31, 0.0  ;;  %v892_v33 = vsel %vm203_vm0, %v2567_v32, 0.0 }
 0x382   : > { %v2102_v23 = vpop.eup %2101  ;;  %890 = vadd.xlane.f32.xlu1 %v889_v22  ;;  %887 = vadd.xlane.f32.xlu0 %v886_v30 }
 0x383   : > { %v829_v17 = vmul.f32 %v2102_v23, %v2094_v53 }
 0x385   : > { %v845_v34 = vrot.slane %v829_v17, %v2402_v57 }
 0x386   : > { %896 = vadd.xlane.f32.xlu1 %v895_v16  ;;  %893 = vadd.xlane.f32.xlu0 %v892_v33 }
 0x387   : > { %v2575_v21 = vadd.f32 %v845_v34, %v2281_v25  ;;  %v2578_v20 = vadd.f32 %v845_v34, %v2278_v24  ;;  %v2585_v41 = vadd.f32 %v845_v34, %v2291_v29  ;;  %v2588_v42 = vadd.f32 %v845_v34, %v2288_v28 }
 0x389   : > { %v901_v35 = vsel %vm203_vm0, %v2575_v21, 0.0  ;;  %v898_v40 = vsel %vm203_vm0, %v2578_v20, 0.0  ;;  %v907_v25 = vsel %vm203_vm0, %v2585_v41, 0.0  ;;  %v904_v24 = vsel %vm203_vm0, %v2588_v42, 0.0 }
 0x38a   : > { %902 = vadd.xlane.f32.xlu1 %v901_v35  ;;  %899 = vadd.xlane.f32.xlu0 %v898_v40 }
 0x38e   : > { %908 = vadd.xlane.f32.xlu1 %v907_v25  ;;  %905 = vadd.xlane.f32.xlu0 %v904_v24 }
 0x3ff   : > { %v867_v57 = vpop.xlane.xlu1 %866  ;;  %v864_v36 = vpop.xlane.xlu0 %863 }
 0x400   : > { %v911_v54 = vmul.f32 0.03125, %v867_v57  ;;  %v910_v47 = vmul.f32 0.03125, %v864_v36 }
 0x402   : > { %v2595_v29 = vsub.f32 %v2512_v6, %v911_v54  ;;  %v2598_v28 = vsub.f32 %v2515_v7, %v910_v47 }
 0x403   : > { %v873_v48 = vpop.xlane.xlu1 %872  ;;  %v870_v49 = vpop.xlane.xlu0 %869 }
 0x404   : > { %v913_v38 = vmul.f32 0.03125, %v873_v48  ;;  %v912_v52 = vmul.f32 0.03125, %v870_v49  ;;  %v943_v39 = vmul.f32 %v2595_v29, %v2595_v29  ;;  %v942_v50 = vmul.f32 %v2598_v28, %v2598_v28 }
 0x406   : > { %v2605_v53 = vsub.f32 %v2522_v62, %v913_v38  ;;  %v2608_v56 = vsub.f32 %v2525_v63, %v912_v52  ;;  %v961_v55 = vsel %vm203_vm0, %v943_v39, 0.0  ;;  %v958_v51 = vsel %vm203_vm0, %v942_v50, 0.0 }
 0x407   : > { %v879_v58 = vpop.xlane.xlu1 %878  ;;  %962 = vadd.xlane.f32.xlu1 %v961_v55  ;;  %959 = vadd.xlane.f32.xlu0 %v958_v51  ;;  %v876_v59 = vpop.xlane.xlu0 %875 }
 0x408   : > { %v915_v44 = vmul.f32 0.03125, %v879_v58  ;;  %v914_v61 = vmul.f32 0.03125, %v876_v59  ;;  %v945_v10 = vmul.f32 %v2605_v53, %v2605_v53  ;;  %v944_v14 = vmul.f32 %v2608_v56, %v2608_v56 }
 0x40a   : > { %v2617_v37 = vsub.f32 %v2533_v5, %v915_v44  ;;  %v2620_v2 = vsub.f32 %v2536_v1, %v914_v61  ;;  %v967_v0 = vsel %vm203_vm0, %v945_v10, 0.0  ;;  %v964_v11 = vsel %vm203_vm0, %v944_v14, 0.0 }
 0x40b   : > { %v885_v26 = vpop.xlane.xlu1 %884  ;;  %968 = vadd.xlane.f32.xlu1 %v967_v0  ;;  %965 = vadd.xlane.f32.xlu0 %v964_v11  ;;  %v882_v18 = vpop.xlane.xlu0 %881 }
 0x40c   : > { %v917_v45 = vmul.f32 0.03125, %v885_v26  ;;  %v916_v19 = vmul.f32 0.03125, %v882_v18  ;;  %v947_v3 = vmul.f32 %v2617_v37, %v2617_v37  ;;  %v946_v9 = vmul.f32 %v2620_v2, %v2620_v2 }
 0x40e   : > { %v2629_v8 = vsub.f32 %v2543_v27, %v917_v45  ;;  %v2632_v4 = vsub.f32 %v2546_v43, %v916_v19  ;;  %v973_v15 = vsel %vm203_vm0, %v947_v3, 0.0  ;;  %v970_v22 = vsel %vm203_vm0, %v946_v9, 0.0 }
 0x40f   : > { %974 = vadd.xlane.f32.xlu1 %v973_v15  ;;  %v891_v30 = vpop.xlane.xlu1 %890  ;;  %971 = vadd.xlane.f32.xlu0 %v970_v22  ;;  %v888_v23 = vpop.xlane.xlu0 %887 }
 0x410   : > { %v919_v17 = vmul.f32 0.03125, %v891_v30  ;;  %v918_v16 = vmul.f32 0.03125, %v888_v23  ;;  %v949_v33 = vmul.f32 %v2629_v8, %v2629_v8  ;;  %v948_v34 = vmul.f32 %v2632_v4, %v2632_v4 }
 0x412   : > { %v2641_v35 = vsub.f32 %v2554_v13, %v919_v17  ;;  %v2644_v40 = vsub.f32 %v2557_v12, %v918_v16  ;;  %v979_v25 = vsel %vm203_vm0, %v949_v33, 0.0  ;;  %v976_v24 = vsel %vm203_vm0, %v948_v34, 0.0 }
 0x413   : > { %980 = vadd.xlane.f32.xlu1 %v979_v25  ;;  %v897_v57 = vpop.xlane.xlu1 %896  ;;  %977 = vadd.xlane.f32.xlu0 %v976_v24  ;;  %v894_v36 = vpop.xlane.xlu0 %893  ;;  %v191_v25 = vld [vmem:[%s3012_s1] sm:$0xff]  ;;  %v192_v24 = vld [vmem:[%s3012_s1 + $0x8] sm:$0xff] }
 0x414   : > { %v921_v54 = vmul.f32 0.03125, %v897_v57  ;;  %v920_v47 = vmul.f32 0.03125, %v894_v36  ;;  %v951_v48 = vmul.f32 %v2641_v35, %v2641_v35  ;;  %v950_v49 = vmul.f32 %v2644_v40, %v2644_v40  ;;  %v193_v36 = vld [vmem:[%s3012_s1 + $0x10] sm:$0xff] }
 0x415   : > { %v2012_v57 = vpack.c.bf16 %v192_v24, %v191_v25 }
 0x416   : > { %v2653_v38 = vsub.f32 %v2564_v31, %v921_v54  ;;  %v2656_v52 = vsub.f32 %v2567_v32, %v920_v47  ;;  %v985_v39 = vsel %vm203_vm0, %v951_v48, 0.0  ;;  %v982_v50 = vsel %vm203_vm0, %v950_v49, 0.0  ;;  %v194_v54 = vld [vmem:[%s3012_s1 + $0x18] sm:$0xff] }
 0x417   : > { %986 = vadd.xlane.f32.xlu1 %v985_v39  ;;  %v903_v55 = vpop.xlane.xlu1 %902  ;;  %983 = vadd.xlane.f32.xlu0 %v982_v50  ;;  %v900_v51 = vpop.xlane.xlu0 %899  ;;  %v2016_v47 = vpack.c.bf16 %v194_v54, %v193_v36 }
 0x418   : > { %v923_v58 = vmul.f32 0.03125, %v903_v55  ;;  %v922_v59 = vmul.f32 0.03125, %v900_v51  ;;  %v953_v44 = vmul.f32 %v2653_v38, %v2653_v38  ;;  %v952_v61 = vmul.f32 %v2656_v52, %v2656_v52  ;;  %2013 = vmatprep.subr.bf16.mxu0 %v2012_v57 }
 0x419   : > { %2015 = vmatpush3.bf16.msra.mxu0 %v2012_v57 }
 0x41a   : > { %v2665_v10 = vsub.f32 %v2575_v21, %v923_v58  ;;  %v2668_v14 = vsub.f32 %v2578_v20, %v922_v59  ;;  %v991_v0 = vsel %vm203_vm0, %v953_v44, 0.0  ;;  %v988_v11 = vsel %vm203_vm0, %v952_v61, 0.0  ;;  %2017 = vmatprep.subr.bf16.mxu0 %v2016_v47 }
 0x41b   : > { %992 = vadd.xlane.f32.xlu1 %v991_v0  ;;  %v909_v26 = vpop.xlane.xlu1 %908  ;;  %989 = vadd.xlane.f32.xlu0 %v988_v11  ;;  %v906_v18 = vpop.xlane.xlu0 %905 }
 0x41c   : > { %v925_v45 = vmul.f32 0.03125, %v909_v26  ;;  %v924_v19 = vmul.f32 0.03125, %v906_v18  ;;  %v955_v3 = vmul.f32 %v2665_v10, %v2665_v10  ;;  %v954_v9 = vmul.f32 %v2668_v14, %v2668_v14 }
 0x41d   : > { %2019 = vmatpush3.bf16.msra.mxu0 %v2016_v47 }
 0x41e   : > { %v2677_v15 = vsub.f32 %v2585_v41, %v925_v45  ;;  %v2680_v22 = vsub.f32 %v2588_v42, %v924_v19  ;;  %v997_v30 = vsel %vm203_vm0, %v955_v3, 0.0  ;;  %v994_v23 = vsel %vm203_vm0, %v954_v9, 0.0 }
 0x41f   : > { %998 = vadd.xlane.f32.xlu1 %v997_v30  ;;  %995 = vadd.xlane.f32.xlu0 %v994_v23  ;;  %v1072_v3 = vsub.s32 3, %v2399_v46 }
 0x420   : > { %v957_v17 = vmul.f32 %v2677_v15, %v2677_v15  ;;  %v956_v16 = vmul.f32 %v2680_v22, %v2680_v22 }
 0x421   : > { %v2705_v25 = vrot.slane %v2407_v60, %v1072_v3 }
 0x422   : > { %v1003_v33 = vsel %vm203_vm0, %v957_v17, 0.0  ;;  %v1000_v34 = vsel %vm203_vm0, %v956_v16, 0.0  ;;  %v1092_v16 = vsub.s32 4, %v2399_v46 }
 0x423   : > { %1004 = vadd.xlane.f32.xlu1 %v1003_v33  ;;  %1001 = vadd.xlane.f32.xlu0 %v1000_v34 }
 0x494   : > { %v963_v48 = vpop.xlane.xlu1 %962  ;;  %v960_v49 = vpop.xlane.xlu0 %959 }
 0x495   : > { %v1007_v39 = vmul.f32 0.03125, %v963_v48  ;;  %v1006_v50 = vmul.f32 0.03125, %v960_v49 }
 0x497   : > { %v1023_v55 = vadd.f32 1e-05, %v1007_v39  ;;  %v1022_v51 = vadd.f32 1e-05, %v1006_v50  ;;  %v2709_v39 = vrot.slane %v2407_v60, %v1092_v16 }
 0x498   : > { %v969_v58 = vpop.xlane.xlu1 %968  ;;  %v966_v59 = vpop.xlane.xlu0 %965 }
 0x499   : > { %2103 = vrsqrt.f32 %v1023_v55  ;;  %v1009_v44 = vmul.f32 0.03125, %v969_v58  ;;  %v1008_v61 = vmul.f32 0.03125, %v966_v59 }
 0x49a   : > { %2105 = vrsqrt.f32 %v1022_v51 }
 0x49b   : > { %v1025_v0 = vadd.f32 1e-05, %v1009_v44  ;;  %v1024_v11 = vadd.f32 1e-05, %v1008_v61 }
 0x49c   : > { %v975_v26 = vpop.xlane.xlu1 %974  ;;  %v972_v18 = vpop.xlane.xlu0 %971 }
 0x49d   : > { %2107 = vrsqrt.f32 %v1025_v0  ;;  %v1011_v45 = vmul.f32 0.03125, %v975_v26  ;;  %v1010_v19 = vmul.f32 0.03125, %v972_v18 }
 0x49e   : > { %2109 = vrsqrt.f32 %v1024_v11 }
 0x49f   : > { %v1027_v9 = vadd.f32 1e-05, %v1011_v45  ;;  %v1026_v30 = vadd.f32 1e-05, %v1010_v19 }
 0x4a0   : > { %v981_v23 = vpop.xlane.xlu1 %980  ;;  %v978_v17 = vpop.xlane.xlu0 %977 }
 0x4a1   : > { %2111 = vrsqrt.f32 %v1027_v9  ;;  %v1013_v33 = vmul.f32 0.03125, %v981_v23  ;;  %v1012_v34 = vmul.f32 0.03125, %v978_v17 }
 0x4a2   : > { %2113 = vrsqrt.f32 %v1026_v30 }
 0x4a3   : > { %v2104_v24 = vpop.eup %2103  ;;  %v1029_v57 = vadd.f32 1e-05, %v1013_v33  ;;  %v1028_v36 = vadd.f32 1e-05, %v1012_v34 }
 0x4a4   : > { %v2106_v54 = vpop.eup %2105  ;;  %v1055_v47 = vmul.f32 %v2104_v24, %v2595_v29  ;;  %v987_v48 = vpop.xlane.xlu1 %986 }
 0x4a5   : > { %v984_v49 = vpop.xlane.xlu0 %983  ;;  %2115 = vrsqrt.f32 %v1029_v57  ;;  %v1015_v50 = vmul.f32 0.03125, %v987_v48  ;;  %v1054_v51 = vmul.f32 %v2106_v54, %v2598_v28 }
 0x4a6   : > { %v1014_v55 = vmul.f32 0.03125, %v984_v49  ;;  %2117 = vrsqrt.f32 %v1028_v36  ;;  %v1075_v58 = vmul.f32 %v2705_v25, %v1055_v47 }
 0x4a7   : > { %v2108_v59 = vpop.eup %2107  ;;  %v1031_v44 = vadd.f32 1e-05, %v1015_v50  ;;  %v1074_v0 = vmul.f32 %v2705_v25, %v1054_v51 }
 0x4a8   : > { %v1030_v61 = vadd.f32 1e-05, %v1014_v55  ;;  %v2110_v11 = vpop.eup %2109  ;;  %v993_v29 = vpop.xlane.xlu1 %992  ;;  %v1095_v18 = vadd.f32 %v2709_v39, %v1075_v58  ;;  %v1057_v60 = vmul.f32 %v2108_v59, %v2605_v53 }
 0x4a9   : > { %v990_v26 = vpop.xlane.xlu0 %989  ;;  %2119 = vrsqrt.f32 %v1031_v44  ;;  %v1017_v45 = vmul.f32 0.03125, %v993_v29  ;;  %v1094_v28 = vadd.f32 %v2709_v39, %v1074_v0  ;;  %v1056_v3 = vmul.f32 %v2110_v11, %v2608_v56 }
 0x4aa   : > { %v1016_v19 = vmul.f32 0.03125, %v990_v26  ;;  %2121 = vrsqrt.f32 %v1030_v61  ;;  %v1077_v9 = vmul.f32 %v2705_v25, %v1057_v60 }
 0x4ab   : > { %v2112_v30 = vpop.eup %2111  ;;  %v1033_v23 = vadd.f32 1e-05, %v1017_v45  ;;  %1916 = vmatprep.mubr.msk.f32.mxu0 %vm203_vm0, %v1094_v28  ;;  %v1076_v34 = vmul.f32 %v2705_v25, %v1056_v3 }
 0x4ac   : > { %v1032_v17 = vadd.f32 1e-05, %v1016_v19  ;;  %v2114_v16 = vpop.eup %2113  ;;  %1917 = vmatmul.mubr.msk.f32.vlgmr.msra.gmra.mrb[4].mxu0 %vm203_vm0, %v1095_v18  ;;  %v999_v33 = vpop.xlane.xlu1 %998  ;;  %v1097_v24 = vadd.f32 %v2709_v39, %v1077_v9  ;;  %v1059_v57 = vmul.f32 %v2112_v30, %v2617_v37 }
 0x4ad   : > { %v996_v53 = vpop.xlane.xlu0 %995  ;;  %2123 = vrsqrt.f32 %v1033_v23  ;;  %v1019_v56 = vmul.f32 0.03125, %v999_v33  ;;  %v1058_v54 = vmul.f32 %v2114_v16, %v2620_v2  ;;  %v1096_v47 = vadd.f32 %v2709_v39, %v1076_v34 }
 0x4ae   : > { %v1018_v36 = vmul.f32 0.03125, %v996_v53  ;;  %2125 = vrsqrt.f32 %v1032_v17  ;;  %v1079_v48 = vmul.f32 %v2705_v25, %v1059_v57 }
 0x4af   : > { %v2116_v49 = vpop.eup %2115  ;;  %v1035_v50 = vadd.f32 1e-05, %v1019_v56  ;;  %v1078_v51 = vmul.f32 %v2705_v25, %v1058_v54  ;;  %1919 = vmatprep.mubr.msk.f32.mxu0 %vm203_vm0, %v1096_v47 }
 0x4b0   : > { %v1034_v55 = vadd.f32 1e-05, %v1018_v36  ;;  %v2118_v58 = vpop.eup %2117  ;;  %v1005_v59 = vpop.xlane.xlu1 %1004  ;;  %v1099_v44 = vadd.f32 %v2709_v39, %v1079_v48  ;;  %v1061_v61 = vmul.f32 %v2116_v49, %v2629_v8  ;;  %1920 = vmatmul.mubr.msk.f32.gmra.mrb[6].mxu0 %vm203_vm0, %v1097_v24 }
 0x4b1   : > { %v1002_v37 = vpop.xlane.xlu0 %1001  ;;  %2127 = vrsqrt.f32 %v1035_v50  ;;  %v1021_v2 = vmul.f32 0.03125, %v1005_v59  ;;  %v1098_v11 = vadd.f32 %v2709_v39, %v1078_v51  ;;  %v1060_v29 = vmul.f32 %v2118_v58, %v2632_v4 }
 0x4b2   : > { %v1020_v0 = vmul.f32 0.03125, %v1002_v37  ;;  %2129 = vrsqrt.f32 %v1034_v55  ;;  %v1081_v26 = vmul.f32 %v2705_v25, %v1061_v61 }
 0x4b3   : > { %v2120_v18 = vpop.eup %2119  ;;  %v1037_v60 = vadd.f32 1e-05, %v1021_v2  ;;  %1922 = vmatprep.mubr.msk.f32.mxu0 %vm203_vm0, %v1098_v11  ;;  %v1080_v8 = vmul.f32 %v2705_v25, %v1060_v29  ;;  %v200_v11 = vld [vmem:[%s3012_s1 + $0x48] sm:$0xff] }
 0x4b4   : > { %v1036_v45 = vadd.f32 1e-05, %v1020_v0  ;;  %v2122_v19 = vpop.eup %2121  ;;  %v1063_v28 = vmul.f32 %v2120_v18, %v2641_v35  ;;  %1923 = vmatmul.mubr.msk.f32.gmra.mrb[8].mxu0 %vm203_vm0, %v1099_v44  ;;  %v1101_v3 = vadd.f32 %v2709_v39, %v1081_v26  ;;  %v196_v44 = vld [vmem:[%s3012_s1 + $0x28] sm:$0xff]  ;;  %v199_v0 = vld [vmem:[%s3012_s1 + $0x40] sm:$0xff]  ;;  %v201_v26 = vld [vmem:[%s3012_s1 + $0x50] sm:$0xff] }
 0x4b5   : > { %2131 = vrsqrt.f32 %v1037_v60  ;;  %v1062_v9 = vmul.f32 %v2122_v19, %v2644_v40  ;;  %v1100_v4 = vadd.f32 %v2709_v39, %v1080_v8  ;;  %v2028_v29 = vpack.c.bf16 %v200_v11, %v199_v0  ;;  %v202_v18 = vld [vmem:[%s3012_s1 + $0x58] sm:$0xff]  ;;  %v2802_v19 = vld [vmem:[%s3013_s2] sm:$0xff] }
 0x4b6   : > { %2133 = vrsqrt.f32 %v1036_v45  ;;  %v1083_v30 = vmul.f32 %v2705_v25, %v1063_v28  ;;  %v2032_v60 = vpack.c.bf16 %v202_v18, %v201_v26  ;;  %v1112_v45 = vsub.s32 5, %v2399_v46 }
 0x4b7   : > { %v2124_v23 = vpop.eup %2123  ;;  %v1082_v17 = vmul.f32 %v2705_v25, %v1062_v9  ;;  %1925 = vmatprep.mubr.msk.f32.mxu0 %vm203_vm0, %v1100_v4 }
 0x4b8   : > { %v2126_v16 = vpop.eup %2125  ;;  %v1065_v35 = vmul.f32 %v2124_v23, %v2653_v38  ;;  %1926 = vmatmul.mubr.msk.f32.gmra.mrb[10].mxu0 %vm203_vm0, %v1101_v3  ;;  %v1103_v53 = vadd.f32 %v2709_v39, %v1083_v30  ;;  %v2805_v8 = vrot.slane %v2802_v19, %v1112_v45 }
 0x4b9   : > { %v1102_v33 = vadd.f32 %v2709_v39, %v1082_v17  ;;  %v1064_v40 = vmul.f32 %v2126_v16, %v2656_v52 }
 0x4ba   : > { %v1085_v34 = vmul.f32 %v2705_v25, %v1065_v35 }
 0x4bb   : > { %v2128_v24 = vpop.eup %2127  ;;  %1928 = vmatprep.mubr.msk.f32.mxu0 %vm203_vm0, %v1102_v33  ;;  %v1084_v57 = vmul.f32 %v2705_v25, %v1064_v40 }
 0x4bc   : > { %v2130_v56 = vpop.eup %2129  ;;  %v1067_v36 = vmul.f32 %v2128_v24, %v2665_v10  ;;  %1929 = vmatmul.mubr.msk.f32.gmra.mrb[12].mxu0 %vm203_vm0, %v1103_v53  ;;  %v1105_v54 = vadd.f32 %v2709_v39, %v1085_v34 }
 0x4bd   : > { %v1104_v38 = vadd.f32 %v2709_v39, %v1084_v57  ;;  %v1066_v47 = vmul.f32 %v2130_v56, %v2668_v14 }
 0x4be   : > { %v1087_v52 = vmul.f32 %v2705_v25, %v1067_v36 }
 0x4bf   : > { %v2132_v48 = vpop.eup %2131  ;;  %1931 = vmatprep.mubr.msk.f32.mxu0 %vm203_vm0, %v1104_v38  ;;  %v1086_v49 = vmul.f32 %v2705_v25, %v1066_v47 }
 0x4c0   : > { %v2134_v50 = vpop.eup %2133  ;;  %v1069_v55 = vmul.f32 %v2132_v48, %v2677_v15  ;;  %1932 = vmatmul.mubr.msk.f32.gmra.mrb[14].mxu0 %vm203_vm0, %v1105_v54  ;;  %v1107_v51 = vadd.f32 %v2709_v39, %v1087_v52 }
 0x4c1   : > { %v1106_v10 = vadd.f32 %v2709_v39, %v1086_v49  ;;  %v1068_v58 = vmul.f32 %v2134_v50, %v2680_v22  ;;  %v195_v22 = vld [vmem:[%s3012_s1 + $0x20] sm:$0xff] }
 0x4c2   : > { %v1089_v14 = vmul.f32 %v2705_v25, %v1069_v55  ;;  %v2020_v61 = vpack.c.bf16 %v196_v44, %v195_v22 }
 0x4c3   : > { %1934 = vmatprep.mubr.msk.f32.mxu0 %vm203_vm0, %v1106_v10  ;;  %v1088_v59 = vmul.f32 %v2705_v25, %v1068_v58  ;;  %v197_v25 = vld [vmem:[%s3012_s1 + $0x30] sm:$0xff] }
 0x4c4   : > { %1935 = vmatmul.mubr.msk.f32.gmra.mrb[16].mxu0 %vm203_vm0, %v1107_v51  ;;  %v1109_v15 = vadd.f32 %v2709_v39, %v1089_v14  ;;  %2021 = vmatprep.subr.bf16.mxu0 %v2020_v61 }
 0x4c5   : > { %v1108_v37 = vadd.f32 %v2709_v39, %v1088_v59  ;;  %2036 = vmatprep.subr.bf16.mxu1 %v2020_v61  ;;  %2023 = vmatpush3.bf16.msra.mxu0 %v2020_v61  ;;  %v198_v39 = vld [vmem:[%s3012_s1 + $0x38] sm:$0xff] }
 0x4c6   : > { %2040 = vmatpush3.bf16.msra.mxu1 %v2020_v61  ;;  %v2024_v2 = vpack.c.bf16 %v198_v39, %v197_v25 }
 0x4c7   : > { %1937 = vmatprep.mubr.msk.f32.mxu0 %vm203_vm0, %v1108_v37 }
 0x4c8   : > { %1938 = vmatmul.mubr.msk.f32.gmra.mrb[18].mxu0 %vm203_vm0, %v1109_v15  ;;  %2025 = vmatprep.subr.bf16.mxu0 %v2024_v2 }
 0x4c9   : > { %2037 = vmatprep.subr.bf16.mxu1 %v2024_v2  ;;  %2027 = vmatpush3.bf16.msra.mxu0 %v2024_v2 }
 0x4ca   : > { %2041 = vmatpush3.bf16.msra.mxu1 %v2024_v2  ;;  %2029 = vmatprep.subr.bf16.mxu0 %v2028_v29 }
 0x4cb   : > { %2038 = vmatprep.subr.bf16.mxu1 %v2028_v29 }
 0x4cd   : > { %2031 = vmatpush3.bf16.msra.mxu0 %v2028_v29 }
 0x4ce   : > { %2042 = vmatpush3.bf16.msra.mxu1 %v2028_v29  ;;  %2033 = vmatprep.subr.bf16.mxu0 %v2032_v60 }
 0x4cf   : > { %2039 = vmatprep.subr.bf16.mxu1 %v2032_v60 }
 0x4d1   : > { %2035 = vmatpush3.bf16.msra.mxu0 %v2032_v60 }
 0x4d2   : > { %2043 = vmatpush3.bf16.msra.mxu1 %v2032_v60 }
 0x57f   : > { %v1918_v28 = vpop.f32.mrb[4].mxu0 }
 0x580   : > { %v2808_v3 = vadd.f32 %v1918_v28, %v2805_v8  ;;  %v1228_v9 = vpop.f32.mrb[5].mxu0 }
 0x581   : > { %v2811_v4 = vadd.f32 %v1228_v9, %v2805_v8 }
 0x582   : > { %v1308_v30 = vmul.f32 %v2808_v3, %v2808_v3 }
 0x583   : > { %v1307_v23 = vmul.f32 %v2811_v4, %v2811_v4  ;;  %v1921_v16 = vpop.f32.mrb[6].mxu0 }
 0x584   : > { %v1324_v17 = vmul.f32 %v1308_v30, %v2808_v3  ;;  %v2820_v33 = vadd.f32 %v1921_v16, %v2805_v8  ;;  %v1238_v53 = vpop.f32.mrb[7].mxu0 }
 0x585   : > { %v1323_v35 = vmul.f32 %v1307_v23, %v2811_v4  ;;  %v2823_v34 = vadd.f32 %v1238_v53, %v2805_v8 }
 0x586   : > { %v1340_v40 = vmul.f32 0.044715, %v1324_v17  ;;  %v1310_v57 = vmul.f32 %v2820_v33, %v2820_v33 }
 0x587   : > { %v1339_v24 = vmul.f32 0.044715, %v1323_v35  ;;  %v1309_v36 = vmul.f32 %v2823_v34, %v2823_v34  ;;  %v1924_v38 = vpop.f32.mrb[8].mxu0 }
 0x588   : > { %v1356_v56 = vadd.f32 %v1340_v40, %v2808_v3  ;;  %v1326_v47 = vmul.f32 %v1310_v57, %v2820_v33  ;;  %v2833_v52 = vadd.f32 %v1924_v38, %v2805_v8  ;;  %v1248_v48 = vpop.f32.mrb[9].mxu0 }
 0x589   : > { %v1355_v54 = vadd.f32 %v1339_v24, %v2811_v4  ;;  %v1325_v50 = vmul.f32 %v1309_v36, %v2823_v34  ;;  %v2837_v55 = vadd.f32 %v1248_v48, %v2805_v8 }
 0x58a   : > { %v1372_v49 = vmul.f32 0.7978846, %v1356_v56  ;;  %v1342_v51 = vmul.f32 0.044715, %v1326_v47  ;;  %v1312_v58 = vmul.f32 %v2833_v52, %v2833_v52 }
 0x58b   : > { %v1371_v10 = vmul.f32 0.7978846, %v1355_v54  ;;  %v1341_v14 = vmul.f32 0.044715, %v1325_v50  ;;  %v1311_v59 = vmul.f32 %v2837_v55, %v2837_v55  ;;  %v1927_v37 = vpop.f32.mrb[10].mxu0 }
 0x58c   : > { %2135 = vtanh.f32 %v1372_v49  ;;  %v1358_v15 = vadd.f32 %v1342_v51, %v2820_v33  ;;  %v1328_v22 = vmul.f32 %v1312_v58, %v2833_v52  ;;  %v2846_v44 = vadd.f32 %v1927_v37, %v2805_v8  ;;  %v1258_v61 = vpop.f32.mrb[11].mxu0 }
 0x58d   : > { %2137 = vtanh.f32 %v1371_v10  ;;  %v1357_v25 = vadd.f32 %v1341_v14, %v2823_v34  ;;  %v1327_v39 = vmul.f32 %v1311_v59, %v2837_v55  ;;  %v2851_v2 = vadd.f32 %v1258_v61, %v2805_v8 }
 0x58e   : > { %v1374_v0 = vmul.f32 0.7978846, %v1358_v15  ;;  %v1344_v11 = vmul.f32 0.044715, %v1328_v22  ;;  %v1314_v29 = vmul.f32 %v2846_v44, %v2846_v44 }
 0x58f   : > { %v1373_v26 = vmul.f32 0.7978846, %v1357_v25  ;;  %v1343_v18 = vmul.f32 0.044715, %v1327_v39  ;;  %v1313_v60 = vmul.f32 %v2851_v2, %v2851_v2  ;;  %v1930_v45 = vpop.f32.mrb[12].mxu0 }
 0x590   : > { %2139 = vtanh.f32 %v1374_v0  ;;  %v1360_v28 = vadd.f32 %v1344_v11, %v2833_v52  ;;  %v1330_v9 = vmul.f32 %v1314_v29, %v2846_v44  ;;  %v2860_v30 = vadd.f32 %v1930_v45, %v2805_v8  ;;  %v1268_v23 = vpop.f32.mrb[13].mxu0 }
 0x591   : > { %v1359_v17 = vadd.f32 %v1343_v18, %v2837_v55  ;;  %v1329_v16 = vmul.f32 %v1313_v60, %v2851_v2  ;;  %v2865_v35 = vadd.f32 %v1268_v23, %v2805_v8  ;;  %2141 = vtanh.f32 %v1373_v26 }
 0x592   : > { %v1376_v53 = vmul.f32 0.7978846, %v1360_v28  ;;  %v1346_v40 = vmul.f32 0.044715, %v1330_v9  ;;  %v1316_v24 = vmul.f32 %v2860_v30, %v2860_v30 }
 0x593   : > { %v1375_v57 = vmul.f32 0.7978846, %v1359_v17  ;;  %v1345_v56 = vmul.f32 0.044715, %v1329_v16  ;;  %v1315_v36 = vmul.f32 %v2865_v35, %v2865_v35  ;;  %v1933_v38 = vpop.f32.mrb[14].mxu0 }
 0x594   : > { %2143 = vtanh.f32 %v1376_v53  ;;  %v1362_v54 = vadd.f32 %v1346_v40, %v2846_v44  ;;  %v1332_v47 = vmul.f32 %v1316_v24, %v2860_v30  ;;  %v2874_v48 = vadd.f32 %v1933_v38, %v2805_v8  ;;  %v1278_v49 = vpop.f32.mrb[15].mxu0 }
 0x595   : > { %2145 = vtanh.f32 %v1375_v57  ;;  %v1361_v10 = vadd.f32 %v1345_v56, %v2851_v2  ;;  %v1331_v51 = vmul.f32 %v1315_v36, %v2865_v35  ;;  %v2879_v58 = vadd.f32 %v1278_v49, %v2805_v8 }
 0x596   : > { %v2136_v50 = vpop.eup %2135  ;;  %v1378_v37 = vmul.f32 0.7978846, %v1362_v54  ;;  %v1348_v15 = vmul.f32 0.044715, %v1332_v47  ;;  %v1318_v22 = vmul.f32 %v2874_v48, %v2874_v48 }
 0x597   : > { %v2138_v14 = vpop.eup %2137  ;;  %v1404_v59 = vadd.f32 1.0, %v2136_v50  ;;  %v1377_v61 = vmul.f32 0.7978846, %v1361_v10  ;;  %v1347_v25 = vmul.f32 0.044715, %v1331_v51  ;;  %v1317_v39 = vmul.f32 %v2879_v58, %v2879_v58  ;;  %v1936_v0 = vpop.f32.mrb[16].mxu0 }
 0x598   : > { %v1403_v11 = vadd.f32 1.0, %v2138_v14  ;;  %2147 = vtanh.f32 %v1378_v37  ;;  %v1364_v26 = vadd.f32 %v1348_v15, %v2860_v30  ;;  %v1334_v18 = vmul.f32 %v1318_v22, %v2874_v48  ;;  %v1288_v60 = vpop.f32.mrb[17].mxu0 }
 0x599   : > { %v1420_v29 = vmul.f32 0.5, %v1404_v59  ;;  %2149 = vtanh.f32 %v1377_v61  ;;  %v1363_v45 = vadd.f32 %v1347_v25, %v2865_v35  ;;  %v1333_v28 = vmul.f32 %v1317_v39, %v2879_v58 }
 0x59a   : > { %v2890_v9 = vadd.f32 %v1936_v0, %v2805_v8  ;;  %v2140_v23 = vpop.eup %2139  ;;  %v1380_v16 = vmul.f32 0.7978846, %v1364_v26  ;;  %v1350_v53 = vmul.f32 0.044715, %v1334_v18  ;;  %v2894_v40 = vadd.f32 %v1288_v60, %v2805_v8 }
 0x59b   : > { %v1436_v17 = vmul.f32 %v1420_v29, %v2808_v3  ;;  %v1406_v24 = vadd.f32 1.0, %v2140_v23  ;;  %v1379_v57 = vmul.f32 0.7978846, %v1363_v45  ;;  %v1349_v56 = vmul.f32 0.044715, %v1333_v28  ;;  %v1939_v38 = vpop.f32.mrb[18].mxu0  ;;  %v2142_v50 = vpop.eup %2141 }
 0x59c   : > { %v1320_v36 = vmul.f32 %v2890_v9, %v2890_v9  ;;  %2151 = vtanh.f32 %v1380_v16  ;;  %v1366_v54 = vadd.f32 %v1350_v53, %v2874_v48  ;;  %v1319_v47 = vmul.f32 %v2894_v40, %v2894_v40  ;;  %v1298_v49 = vpop.f32.mrb[19].mxu0 }
 0x59d   : > { %v2902_v3 = vadd.f32 %v1939_v38, %v2805_v8  ;;  %v1422_v10 = vmul.f32 0.5, %v1406_v24  ;;  %2153 = vtanh.f32 %v1379_v57  ;;  %v1365_v51 = vadd.f32 %v1349_v56, %v2879_v58 }
 0x59e   : > { %v1336_v14 = vmul.f32 %v1320_v36, %v2890_v9  ;;  %v2144_v59 = vpop.eup %2143  ;;  %v1382_v37 = vmul.f32 0.7978846, %v1366_v54  ;;  %v1335_v15 = vmul.f32 %v1319_v47, %v2894_v40  ;;  %v2910_v61 = vadd.f32 %v1298_v49, %v2805_v8 }
 0x59f   : > { %v1322_v22 = vmul.f32 %v2902_v3, %v2902_v3  ;;  %v2146_v25 = vpop.eup %2145  ;;  %v1438_v39 = vmul.f32 %v1422_v10, %v2820_v33  ;;  %v1381_v0 = vmul.f32 0.7978846, %v1365_v51  ;;  %v1419_v26 = vmul.f32 0.5, %v1403_v11 }
 0x5a0   : > { %v1352_v29 = vmul.f32 0.044715, %v1336_v14  ;;  %2155 = vtanh.f32 %v1382_v37  ;;  %v1351_v18 = vmul.f32 0.044715, %v1335_v15  ;;  %v1321_v45 = vmul.f32 %v2910_v61, %v2910_v61 }
 0x5a1   : > { %v1338_v60 = vmul.f32 %v1322_v22, %v2902_v3  ;;  %2157 = vtanh.f32 %v1381_v0  ;;  %v1435_v23 = vmul.f32 %v1419_v26, %v2811_v4  ;;  %v1405_v8 = vadd.f32 1.0, %v2142_v50 }
 0x5a2   : > { %v1368_v28 = vadd.f32 %v1352_v29, %v2890_v9  ;;  %v2148_v16 = vpop.eup %2147  ;;  %v1367_v53 = vadd.f32 %v1351_v18, %v2894_v40  ;;  %v1337_v24 = vmul.f32 %v1321_v45, %v2910_v61  ;;  %v1407_v11 = vadd.f32 1.0, %v2146_v25 }
 0x5a3   : > { %v1354_v33 = vmul.f32 0.044715, %v1338_v60  ;;  %v2150_v57 = vpop.eup %2149  ;;  %1956 = vmatprep.mubr.msk.f32.mxu0 %vm1455_vm4, %v1435_v23  ;;  %v1421_v36 = vmul.f32 0.5, %v1405_v8  ;;  %v1408_v38 = vadd.f32 1.0, %v2144_v59  ;;  %v1410_v54 = vadd.f32 1.0, %v2148_v16 }
 0x5a4   : > { %v1384_v56 = vmul.f32 0.7978846, %v1368_v28  ;;  %v1383_v47 = vmul.f32 0.7978846, %v1367_v53  ;;  %v1353_v10 = vmul.f32 0.044715, %v1337_v24  ;;  %1957 = vmatmul.mubr.msk.f32.vlgmr.msra.gmra.mrb[20].mxu0 %vm1455_vm4, %v1436_v17 }
 0x5a5   : > { %v1370_v49 = vadd.f32 %v1354_v33, %v2902_v3  ;;  %v1423_v4 = vmul.f32 0.5, %v1407_v11  ;;  %v1437_v50 = vmul.f32 %v1421_v36, %v2823_v34  ;;  %v1424_v51 = vmul.f32 0.5, %v1408_v38 }
 0x5a6   : > { %2159 = vtanh.f32 %v1384_v56  ;;  %v1409_v14 = vadd.f32 1.0, %v2150_v57  ;;  %v2152_v37 = vpop.eup %2151  ;;  %v1369_v22 = vadd.f32 %v1353_v10, %v2910_v61  ;;  %v1426_v60 = vmul.f32 0.5, %v1410_v54 }
 0x5a7   : > { %2161 = vtanh.f32 %v1383_v47  ;;  %v1386_v15 = vmul.f32 0.7978846, %v1370_v49  ;;  %v1439_v59 = vmul.f32 %v1423_v4, %v2837_v55  ;;  %v2154_v25 = vpop.eup %2153  ;;  %1959 = vmatprep.mubr.msk.f32.mxu1 %vm1455_vm4, %v1437_v50  ;;  %v1440_v34 = vmul.f32 %v1424_v51, %v2833_v52 }
 0x5a8   : > { %v1425_v0 = vmul.f32 0.5, %v1409_v14  ;;  %v1385_v29 = vmul.f32 0.7978846, %v1369_v22  ;;  %1960 = vmatmul.mubr.msk.f32.vlgmr.msra.gmra.mrb[4].mxu1 %vm1455_vm4, %v1438_v39  ;;  %v1411_v17 = vadd.f32 1.0, %v2154_v25  ;;  %v1412_v55 = vadd.f32 1.0, %v2152_v37 }
 0x5a9   : > { %2163 = vtanh.f32 %v1386_v15  ;;  %1962 = vmatprep.mubr.msk.f32.mxu1 %vm1455_vm4, %v1439_v59  ;;  %v1442_v8 = vmul.f32 %v1426_v60, %v2846_v44 }
 0x5aa   : > { %v1441_v26 = vmul.f32 %v1425_v0, %v2851_v2  ;;  %v2156_v18 = vpop.eup %2155  ;;  %2165 = vtanh.f32 %v1385_v29  ;;  %v1427_v45 = vmul.f32 0.5, %v1411_v17  ;;  %v1428_v16 = vmul.f32 0.5, %v1412_v55 }
 0x5ab   : > { %v2158_v28 = vpop.eup %2157  ;;  %v1414_v52 = vadd.f32 1.0, %v2156_v18 }
 0x5ac   : > { %1963 = vmatmul.mubr.msk.f32.gmra.mrb[6].mxu1 %vm1455_vm4, %v1440_v34  ;;  %v1413_v23 = vadd.f32 1.0, %v2158_v28  ;;  %v1443_v39 = vmul.f32 %v1427_v45, %v2865_v35  ;;  %v1444_v57 = vmul.f32 %v1428_v16, %v2860_v30 }
 0x5ad   : > { %1965 = vmatprep.mubr.msk.f32.mxu1 %vm1455_vm4, %v1441_v26  ;;  %v1430_v56 = vmul.f32 0.5, %v1414_v52 }
 0x5ae   : > { %v1429_v53 = vmul.f32 0.5, %v1413_v23 }
 0x5af   : > { %v1446_v49 = vmul.f32 %v1430_v56, %v2874_v48  ;;  %v1453_v48 = vsub.s32 6, %v2399_v46 }
 0x5b0   : > { %v2160_v33 = vpop.eup %2159  ;;  %1966 = vmatmul.mubr.msk.f32.gmra.mrb[8].mxu1 %vm1455_vm4, %v1442_v8  ;;  %v1445_v24 = vmul.f32 %v1429_v53, %v2879_v58 }
 0x5b1   : > { %v2162_v2 = vpop.eup %2161  ;;  %1968 = vmatprep.mubr.msk.f32.mxu1 %vm1455_vm4, %v1443_v39  ;;  %v1416_v36 = vadd.f32 1.0, %v2160_v33  ;;  %v1454_v14 = vrot.slane %v2802_v19, %v1453_v48 }
 0x5b2   : > { %v1415_v11 = vadd.f32 1.0, %v2162_v2 }
 0x5b3   : > { %v2164_v38 = vpop.eup %2163  ;;  %v1432_v10 = vmul.f32 0.5, %v1416_v36 }
 0x5b4   : > { %v1431_v35 = vmul.f32 0.5, %v1415_v11  ;;  %v2166_v54 = vpop.eup %2165  ;;  %1969 = vmatmul.mubr.msk.f32.gmra.mrb[10].mxu1 %vm1455_vm4, %v1444_v57  ;;  %v1418_v4 = vadd.f32 1.0, %v2164_v38 }
 0x5b5   : > { %1971 = vmatprep.mubr.msk.f32.mxu1 %vm1455_vm4, %v1445_v24  ;;  %v1417_v47 = vadd.f32 1.0, %v2166_v54  ;;  %v1448_v50 = vmul.f32 %v1432_v10, %v2890_v9 }
 0x5b6   : > { %v1447_v44 = vmul.f32 %v1431_v35, %v2894_v40  ;;  %v1434_v51 = vmul.f32 0.5, %v1418_v4 }
 0x5b7   : > { %v1433_v58 = vmul.f32 0.5, %v1417_v47 }
 0x5b8   : > { %1972 = vmatmul.mubr.msk.f32.gmra.mrb[12].mxu1 %vm1455_vm4, %v1446_v49  ;;  %v1450_v40 = vmul.f32 %v1434_v51, %v2902_v3 }
 0x5b9   : > { %1974 = vmatprep.mubr.msk.f32.mxu1 %vm1455_vm4, %v1447_v44  ;;  %v1449_v30 = vmul.f32 %v1433_v58, %v2910_v61 }
 0x5bc   : > { %1975 = vmatmul.mubr.msk.f32.gmra.mrb[14].mxu1 %vm1455_vm4, %v1448_v50 }
 0x5bd   : > { %1977 = vmatprep.mubr.msk.f32.mxu1 %vm1455_vm4, %v1449_v30 }
 0x5c0   : > { %1978 = vmatmul.mubr.msk.f32.gmra.mrb[16].mxu1 %vm1455_vm4, %v1450_v40 }
 0x677   : > { %v1958_v37 = vpop.f32.mrb[20].mxu0 }
 0x678   : > { %v1576_v15 = vadd.f32 %v1958_v37, %v1454_v14  ;;  %v1570_v22 = vpop.f32.mrb[21].mxu0 }
 0x679   : > { %v1571_v9 = vadd.f32 %v1570_v22, %v1454_v14 }
 0x67a   : > { %v1650_v3 = vadd.f32 %v1576_v15, %v2512_v6 }
 0x67b   : > { %v1649_v46 = vadd.f32 %v1571_v9, %v2515_v7  ;;  %v1961_v61 = vpop.f32.mrb[4].mxu1 }
 0x67c   : > { %1666 = vst.msk [vmem:[%s2958_s25 + $0x8] sm:$0xff] %vm203_vm0, %v1650_v3  ;;  %v1586_v19 = vadd.f32 %v1961_v61, %v1454_v14  ;;  %v1580_v59 = vpop.f32.mrb[5].mxu1 }
 0x67d   : > { %1665 = vst.msk [vmem:[%s2958_s25] sm:$0xff] %vm203_vm0, %v1649_v46  ;;  %v1581_v25 = vadd.f32 %v1580_v59, %v1454_v14 }
 0x67e   : > { %v1652_v0 = vadd.f32 %v1586_v19, %v2522_v62 }
 0x67f   : > { %v1651_v29 = vadd.f32 %v1581_v25, %v2525_v63  ;;  %v1964_v17 = vpop.f32.mrb[6].mxu1 }
 0x680   : > { %1668 = vst.msk [vmem:[%s2958_s25 + $0x18] sm:$0xff] %vm203_vm0, %v1652_v0  ;;  %v1596_v6 = vadd.f32 %v1964_v17, %v1454_v14  ;;  %v1590_v7 = vpop.f32.mrb[7].mxu1 }
 0x681   : > { %1667 = vst.msk [vmem:[%s2958_s25 + $0x10] sm:$0xff] %vm203_vm0, %v1651_v29  ;;  %v1591_v34 = vadd.f32 %v1590_v7, %v1454_v14 }
 0x682   : > { %v1654_v26 = vadd.f32 %v1596_v6, %v2533_v5 }
 0x683   : > { %v1653_v18 = vadd.f32 %v1591_v34, %v2536_v1  ;;  %v1967_v60 = vpop.f32.mrb[8].mxu1 }
 0x684   : > { %1670 = vst.msk [vmem:[%s2958_s25 + $0x28] sm:$0xff] %vm203_vm0, %v1654_v26  ;;  %v1606_v62 = vadd.f32 %v1967_v60, %v1454_v14  ;;  %v1600_v63 = vpop.f32.mrb[9].mxu1 }
 0x685   : > { %1669 = vst.msk [vmem:[%s2958_s25 + $0x20] sm:$0xff] %vm203_vm0, %v1653_v18  ;;  %v1601_v45 = vadd.f32 %v1600_v63, %v1454_v14 }
 0x686   : > { %v1656_v55 = vadd.f32 %v1606_v62, %v2543_v27 }
 0x687   : > { %v1655_v28 = vadd.f32 %v1601_v45, %v2546_v43  ;;  %v1970_v23 = vpop.f32.mrb[10].mxu1 }
 0x688   : > { %1672 = vst.msk [vmem:[%s2958_s25 + $0x38] sm:$0xff] %vm203_vm0, %v1656_v55  ;;  %v1616_v5 = vadd.f32 %v1970_v23, %v1454_v14  ;;  %v1610_v1 = vpop.f32.mrb[11].mxu1 }
 0x689   : > { %1671 = vst.msk [vmem:[%s2958_s25 + $0x30] sm:$0xff] %vm203_vm0, %v1655_v28  ;;  %v1611_v39 = vadd.f32 %v1610_v1, %v1454_v14 }
 0x68a   : > { %v1658_v8 = vadd.f32 %v1616_v5, %v2554_v13 }
 0x68b   : > { %v1657_v16 = vadd.f32 %v1611_v39, %v2557_v12  ;;  %v1973_v53 = vpop.f32.mrb[12].mxu1 }
 0x68c   : > { %1674 = vst.msk [vmem:[%s2958_s25 + $0x48] sm:$0xff] %vm203_vm0, %v1658_v8  ;;  %v1626_v27 = vadd.f32 %v1973_v53, %v1454_v14  ;;  %v1620_v43 = vpop.f32.mrb[13].mxu1 }
 0x68d   : > { %1673 = vst.msk [vmem:[%s2958_s25 + $0x40] sm:$0xff] %vm203_vm0, %v1657_v16  ;;  %v1621_v52 = vadd.f32 %v1620_v43, %v1454_v14 }
 0x68e   : > { %v1660_v33 = vadd.f32 %v1626_v27, %v2564_v31 }
 0x68f   : > { %v1659_v2 = vadd.f32 %v1621_v52, %v2567_v32  ;;  %v1976_v24 = vpop.f32.mrb[14].mxu1 }
 0x690   : > { %1676 = vst.msk [vmem:[%s2958_s25 + $0x58] sm:$0xff] %vm203_vm0, %v1660_v33  ;;  %v1636_v13 = vadd.f32 %v1976_v24, %v1454_v14  ;;  %v1630_v12 = vpop.f32.mrb[15].mxu1 }
 0x691   : > { %1675 = vst.msk [vmem:[%s2958_s25 + $0x50] sm:$0xff] %vm203_vm0, %v1659_v2  ;;  %v1631_v11 = vadd.f32 %v1630_v12, %v1454_v14 }
 0x692   : > { %v1662_v57 = vadd.f32 %v1636_v13, %v2575_v21 }
 0x693   : > { %v1661_v56 = vadd.f32 %v1631_v11, %v2578_v20  ;;  %v1979_v36 = vpop.f32.mrb[16].mxu1 }
 0x694   : > { %1678 = vst.msk [vmem:[%s2958_s25 + $0x68] sm:$0xff] %vm203_vm0, %v1662_v57  ;;  %v1646_v31 = vadd.f32 %v1979_v36, %v1454_v14  ;;  %v1640_v38 = vpop.f32.mrb[17].mxu1 }
 0x695   : > { %1677 = vst.msk [vmem:[%s2958_s25 + $0x60] sm:$0xff] %vm203_vm0, %v1661_v56  ;;  %v1641_v32 = vadd.f32 %v1640_v38, %v1454_v14 }
 0x696   : > { %v1664_v35 = vadd.f32 %v1646_v31, %v2585_v41 }
 0x697   : > { %v1663_v54 = vadd.f32 %v1641_v32, %v2588_v42 }
 0x698   : > { %1680 = vst.msk [vmem:[%s2958_s25 + $0x78] sm:$0xff] %vm203_vm0, %v1664_v35 }
 0x699   : > { %1679 = vst.msk [vmem:[%s2958_s25 + $0x70] sm:$0xff] %vm203_vm0, %v1663_v54 }
 0x69a PF: > { %s13_s12 = sadd.s32 1, %s2174_s12  }
 0x69b   : > { %p10_p4 = scmp.ge.s32.totalorder %s13_s12, 4  }
 0x69d   :  { %12 = sbr.rel (!%p10_p4) target bundleno = 1 (0x1), region = 62 }

</bundles_post_ra>
